<compile_context>
chip_gen: v7x
topology: tpu7x:2x2x1
jax: 0.10.0
libtpu: 0.0.40
codegen_flags: <defaults>
</compile_context>

<pallas_src>
import functools

import jax
import jax.numpy as jnp
from jax.experimental import pallas as pl
from jax.experimental.pallas import tpu as pltpu


def _rup(x, m):
    return (x + m - 1) // m * m


def _tile_m(M):
    """Largest row tile (<=256, multiple of 8) dividing the padded row count."""
    Mp = _rup(M, 8)
    for t in (256, 128, 64, 32, 16, 8):
        if Mp % t == 0:
            return t, Mp
    return 8, Mp


# ----------------------------------------------------------------------------
# Pallas kernel 1: GEMM with fused bias (+ optional ReLU).  bf16 operands,
# f32 accumulation / epilogue, cast at the final store.
# ----------------------------------------------------------------------------
def _gemm_kernel(a_ref, w_ref, b_ref, o_ref, *, relu):
    acc = jnp.dot(a_ref[...], w_ref[...], preferred_element_type=jnp.float32)
    acc = acc + b_ref[...]
    if relu:
        acc = jnp.maximum(acc, 0.0)
    o_ref[...] = acc.astype(o_ref.dtype)


def pallas_matmul(a, w, bias, relu=False, out_dtype=jnp.bfloat16):
    """a: (M, K) bf16, w: (K, N) bf16, bias: (1, N) f32 -> (M, N) out_dtype."""
    M, K = a.shape
    N = w.shape[1]
    TM, Mp = _tile_m(M)
    if Mp != M:                               # never triggered at these shapes
        a = jnp.pad(a, ((0, Mp - M), (0, 0)))
    out = pl.pallas_call(
        functools.partial(_gemm_kernel, relu=relu),
        out_shape=jax.ShapeDtypeStruct((Mp, N), out_dtype),
        grid=(Mp // TM,),
        in_specs=[pl.BlockSpec((TM, K), lambda i: (i, 0)),
                  pl.BlockSpec((K, N), lambda i: (0, 0)),
                  pl.BlockSpec((1, N), lambda i: (0, 0))],
        out_specs=pl.BlockSpec((TM, N), lambda i: (i, 0)),
        compiler_params=pltpu.CompilerParams(dimension_semantics=("parallel",)),
    )(a, w, bias)
    return out[:M] if Mp != M else out


# ----------------------------------------------------------------------------
# Pallas kernel 2: fused ResBlock
#   relu(relu(patches3x3 @ W1 + b1) @ W2 + b2 + x)
# ----------------------------------------------------------------------------
def _resblock_kernel(p_ref, w1_ref, b1_ref, w2_ref, b2_ref, x_ref, o_ref):
    h = jnp.dot(p_ref[...], w1_ref[...], preferred_element_type=jnp.float32)
    h = jnp.maximum(h + b1_ref[...], 0.0)
    out = jnp.dot(h.astype(jnp.bfloat16), w2_ref[...],
                  preferred_element_type=jnp.float32)
    out = out + b2_ref[...] + x_ref[...].astype(jnp.float32)
    o_ref[...] = jnp.maximum(out, 0.0).astype(o_ref.dtype)


def resblock(x, rb):
    B, H, W, C = x.shape
    patches, _, _ = im2col(x, 3, 1, 1)                    # (M, 9*C) bf16
    x_flat = x.reshape(-1, C)
    M, K1 = patches.shape
    N1 = rb["w1"].shape[1]
    N2 = rb["w2"].shape[1]
    TM, Mp = _tile_m(M)
    if Mp != M:
        patches = jnp.pad(patches, ((0, Mp - M), (0, 0)))
        x_flat = jnp.pad(x_flat, ((0, Mp - M), (0, 0)))
    out = pl.pallas_call(
        _resblock_kernel,
        out_shape=jax.ShapeDtypeStruct((Mp, N2), jnp.bfloat16),
        grid=(Mp // TM,),
        in_specs=[pl.BlockSpec((TM, K1), lambda i: (i, 0)),
                  pl.BlockSpec((K1, N1), lambda i: (0, 0)),
                  pl.BlockSpec((1, N1), lambda i: (0, 0)),
                  pl.BlockSpec((N1, N2), lambda i: (0, 0)),
                  pl.BlockSpec((1, N2), lambda i: (0, 0)),
                  pl.BlockSpec((TM, N2), lambda i: (i, 0))],
        out_specs=pl.BlockSpec((TM, N2), lambda i: (i, 0)),
        compiler_params=pltpu.CompilerParams(dimension_semantics=("parallel",)),
    )(patches, rb["w1"], rb["b1"], rb["w2"], rb["b2"], x_flat)
    out = out[:M] if Mp != M else out
    return out.reshape(B, H, W, C)


# ----------------------------------------------------------------------------
# Pallas kernel 3: quantize_conv (1x1) fused with vector quantization.
# Codebook is padded to 128 rows; padded rows carry a huge ||e||^2 so they
# never win the argmin.  ||ze||^2 is dropped from the argmin distance.
# ----------------------------------------------------------------------------
def _vq_kernel(h_ref, wq_ref, bq_ref, e_ref, et_ref, e2_ref, zq_ref, md_ref):
    ze = jnp.dot(h_ref[...], wq_ref[...], preferred_element_type=jnp.float32)
    ze = ze + bq_ref[...]                                          # (TM, ed) f32
    cross = jnp.dot(ze, et_ref[...], preferred_element_type=jnp.float32)  # (TM, Kp)
    dist = e2_ref[...] - 2.0 * cross
    dmin = jnp.min(dist, axis=-1, keepdims=True)
    iota = jax.lax.broadcasted_iota(jnp.int32, dist.shape, 1)
    idx = jnp.min(jnp.where(dist <= dmin, iota, jnp.int32(2 ** 30)),
                  axis=-1, keepdims=True)                          # first argmin
    onehot = (iota == idx).astype(jnp.float32)                     # (TM, Kp)
    zq = jnp.dot(onehot, e_ref[...], preferred_element_type=jnp.float32)
    md = jnp.sum((zq - ze) ** 2, axis=-1, keepdims=True)           # exact ||zq-ze||^2
    zq_ref[...] = zq.astype(zq_ref.dtype)
    md_ref[...] = md


def pallas_vq(h_flat, wq, bq, E, Et, e2):
    """h_flat: (M, hd) bf16 -> (zq (M, ed) bf16, md (M, 1) f32)."""
    M, hd = h_flat.shape
    ed = wq.shape[1]
    Kp = E.shape[0]
    TM, Mp = _tile_m(M)
    if Mp != M:
        h_flat = jnp.pad(h_flat, ((0, Mp - M), (0, 0)))
    zq, md = pl.pallas_call(
        _vq_kernel,
        out_shape=(jax.ShapeDtypeStruct((Mp, ed), jnp.bfloat16),
                   jax.ShapeDtypeStruct((Mp, 1), jnp.float32)),
        grid=(Mp // TM,),
        in_specs=[pl.BlockSpec((TM, hd), lambda i: (i, 0)),
                  pl.BlockSpec((hd, ed), lambda i: (0, 0)),
                  pl.BlockSpec((1, ed), lambda i: (0, 0)),
                  pl.BlockSpec((Kp, ed), lambda i: (0, 0)),
                  pl.BlockSpec((ed, Kp), lambda i: (0, 0)),
                  pl.BlockSpec((1, Kp), lambda i: (0, 0))],
        out_specs=(pl.BlockSpec((TM, ed), lambda i: (i, 0)),
                   pl.BlockSpec((TM, 1), lambda i: (i, 0))),
        compiler_params=pltpu.CompilerParams(dimension_semantics=("parallel",)),
    )(h_flat, wq, bq, E, Et, e2)
    if Mp != M:
        zq, md = zq[:M], md[:M]
    return zq, md


# ----------------------------------------------------------------------------
# Conv glue (NHWC): im2col as cheap strided slicing, GEMM in Pallas.
# ----------------------------------------------------------------------------
def im2col(x, k, stride, pad):
    B, H, W, C = x.shape
    xp = jnp.pad(x, ((0, 0), (pad, pad), (pad, pad), (0, 0))) if pad else x
    Ho = (H + 2 * pad - k) // stride + 1
    Wo = (W + 2 * pad - k) // stride + 1
    cols = [xp[:, i:i + stride * Ho:stride, j:j + stride * Wo:stride, :]
            for i in range(k) for j in range(k)]
    p = jnp.stack(cols, axis=3)                        # (B, Ho, Wo, k*k, C)
    return p.reshape(B * Ho * Wo, k * k * C), Ho, Wo


def conv2d(x, wmat, bias, k, stride=1, pad=0, relu=False, out_dtype=jnp.bfloat16):
    B = x.shape[0]
    patches, Ho, Wo = im2col(x, k, stride, pad)
    out = pallas_matmul(patches, wmat, bias, relu=relu, out_dtype=out_dtype)
    return out.reshape(B, Ho, Wo, -1)


def conv_transpose2d_subpixel(x, wphase, bias4, relu=False, out_dtype=jnp.bfloat16):
    """ConvTranspose2d(k=4, stride=2, pad=1) via one 3x3-patch GEMM producing
    all 4 sub-pixel phases + depth-to-space (no zero-dilated input)."""
    B, H, W, _ = x.shape
    patches, _, _ = im2col(x, 3, 1, 1)
    out = pallas_matmul(patches, wphase, bias4, relu=relu, out_dtype=out_dtype)
    Cout = out.shape[-1] // 4
    out = out.reshape(B, H, W, 2, 2, Cout).transpose(0, 1, 3, 2, 4, 5)
    return out.reshape(B, 2 * H, 2 * W, Cout)


# ----------------------------------------------------------------------------
# Parameter init (deterministic, synthetic) with one-time weight packing.
# ----------------------------------------------------------------------------
def init_params(key, cin, hd, ed, ne, n_res):
    bn = jnp.float32(1.0 / jnp.sqrt(jnp.float32(1.0 + 1e-5)))  # folded eval BN
    keys = iter(jax.random.split(key, 64))

    def w(shape, scale=0.05):
        return scale * jax.random.normal(next(keys), shape, jnp.float32)

    def b(n, scale=0.01):
        return scale * jax.random.normal(next(keys), (n,), jnp.float32)

    def pack_conv(W, bias, scale=1.0):
        # W: (Cout, Cin, kh, kw) torch layout -> (kh*kw*Cin, Cout) bf16 GEMM weight
        Cout, Cin, kh, kw = W.shape
        wm = (W * scale).transpose(2, 3, 1, 0).reshape(kh * kw * Cin, Cout)
        return wm.astype(jnp.bfloat16), (bias * scale).reshape(1, Cout).astype(jnp.float32)

    def pack_convT_subpixel(Wt, bias):
        # Wt: (Cin, Cout, 4, 4) torch ConvTranspose2d layout.
        # Phase a (output-row parity): a=0 uses taps kr={3,1} at patch rows {0,1},
        #                              a=1 uses taps kr={2,0} at patch rows {1,2}.
        Cin, Cout = Wt.shape[0], Wt.shape[1]
        row_map = {0: ((0, 3), (1, 1)), 1: ((1, 2), (2, 0))}
        Wp = jnp.zeros((3, 3, Cin, 2, 2, Cout), jnp.float32)
        for a, rws in row_map.items():
            for (dr, kr) in rws:
                for bb, cls in row_map.items():
                    for (dc, kc) in cls:
                        Wp = Wp.at[dr, dc, :, a, bb, :].set(Wt[:, :, kr, kc])
        wm = Wp.reshape(9 * Cin, 4 * Cout).astype(jnp.bfloat16)
        b4 = jnp.tile(bias, 4).reshape(1, 4 * Cout).astype(jnp.float32)
        return wm, b4

    def pack_res(ch):
        w1, b1 = pack_conv(w((ch // 2, ch, 3, 3)), b(ch // 2), scale=bn)  # 3x3 + BN fold
        w2, b2 = pack_conv(w((ch, ch // 2, 1, 1)), b(ch))                  # 1x1
        return {"w1": w1, "b1": b1, "w2": w2, "b2": b2}

    enc_w1, enc_b1 = pack_conv(w((hd // 2, cin, 4, 4)), b(hd // 2), scale=bn)
    enc_w2, enc_b2 = pack_conv(w((hd, hd // 2, 4, 4)), b(hd), scale=bn)
    enc_w3, enc_b3 = pack_conv(w((hd, hd, 3, 3)), b(hd))
    enc_res = [pack_res(hd) for _ in range(n_res)]

    qconv_w, qconv_b = pack_conv(w((ed, hd, 1, 1)), b(ed))

    # Codebook: pad rows to a multiple of 128; padded rows get huge ||e||^2.
    E_real = jax.random.normal(next(keys), (ne, ed), jnp.float32)
    Kp = _rup(ne, 128)
    E = jnp.zeros((Kp, ed), jnp.float32).at[:ne].set(E_real)
    e2 = jnp.sum(E * E, axis=1)
    e2 = jnp.where(jnp.arange(Kp) < ne, e2, 1e30).reshape(1, Kp).astype(jnp.float32)

    dec_w1, dec_b1 = pack_conv(w((hd, ed, 3, 3)), b(hd))
    dec_res = [pack_res(hd) for _ in range(n_res)]
    dec_t1_w, dec_t1_b = pack_convT_subpixel(w((hd, hd // 2, 4, 4)), b(hd // 2))
    dec_t2_w, dec_t2_b = pack_convT_subpixel(w((hd // 2, cin, 4, 4)), b(cin))

    return {
        "enc_w1": enc_w1, "enc_b1": enc_b1,
        "enc_w2": enc_w2, "enc_b2": enc_b2,
        "enc_w3": enc_w3, "enc_b3": enc_b3,
        "enc_res": enc_res,
        "qconv_w": qconv_w, "qconv_b": qconv_b,
        "codebook": E, "codebook_t": E.T, "codebook_e2": e2,
        "dec_w1": dec_w1, "dec_b1": dec_b1,
        "dec_res": dec_res,
        "dec_t1_w": dec_t1_w, "dec_t1_b": dec_t1_b,
        "dec_t2_w": dec_t2_w, "dec_t2_b": dec_t2_b,
    }


# ----------------------------------------------------------------------------
# Forward pass (eval mode)
# ----------------------------------------------------------------------------
def vqvae_forward(params, x_nchw):
    # NCHW -> NHWC once; activations stay bf16/NHWC throughout.
    x = jnp.transpose(x_nchw, (0, 2, 3, 1)).astype(jnp.bfloat16)

    # ---- Encoder (downsample_ratio=4; BN folded, Dropout = identity) ----
    h = conv2d(x, params["enc_w1"], params["enc_b1"], 4, stride=2, pad=1, relu=True)
    h = conv2d(h, params["enc_w2"], params["enc_b2"], 4, stride=2, pad=1, relu=True)
    h = conv2d(h, params["enc_w3"], params["enc_b3"], 3, stride=1, pad=1, relu=True)
    for rb in params["enc_res"]:
        h = resblock(h, rb)

    # ---- quantize_conv (1x1) fused with vector quantization ----
    # TODO(synk): training-only EMA codebook update (update_weights) is not part
    # of the inference forward pass and is not implemented.
    B, Hh, Ww, hd = h.shape
    zq_flat, md = pallas_vq(h.reshape(B * Hh * Ww, hd),
                            params["qconv_w"], params["qconv_b"],
                            params["codebook"], params["codebook_t"],
                            params["codebook_e2"])
    ed = zq_flat.shape[-1]
    sqdist = jnp.sum(md) / (B * Hh * Ww * ed)
    # straight-through: forward value of zq is exactly the quantized vector
    zq = zq_flat.reshape(B, Hh, Ww, ed)

    # ---- Decoder (upsample_ratio=4) ----
    y = conv2d(zq, params["dec_w1"], params["dec_b1"], 3, stride=1, pad=1, relu=True)
    for rb in params["dec_res"]:
        y = resblock(y, rb)
    y = conv_transpose2d_subpixel(y, params["dec_t1_w"], params["dec_t1_b"], relu=True)
    y = conv_transpose2d_subpixel(y, params["dec_t2_w"], params["dec_t2_b"], relu=True,
                                  out_dtype=jnp.float32)
    return jnp.transpose(y, (0, 3, 1, 2)), sqdist        # NHWC -> NCHW once


if __name__ == "__main__":
    B, Cin, H, W = 2, 3, 16, 16
    hidden_dim, embed_dim, n_embed, n_resblocks = 32, 16, 64, 2

    root = jax.random.PRNGKey(0)
    pkey, xkey = jax.random.split(root)
    params = init_params(pkey, Cin, hidden_dim, embed_dim, n_embed, n_resblocks)
    x = jax.random.normal(xkey, (B, Cin, H, W), jnp.float32)

    decoded, sqdist = jax.jit(vqvae_forward)(params, x)
    jax.block_until_ready((decoded, sqdist))

    assert decoded.shape == (B, Cin, H, W), decoded.shape
    assert sqdist.shape == ()
    assert jnp.isfinite(decoded).all() and jnp.isfinite(sqdist)
    print("KERNEL_OK")
</pallas_src>

<mosaic_0001>
module attributes {stable_mosaic.version = 11 : i64} {
  func.func @_gemm_kernel(%arg0: i32, %arg1: memref<128x48xbf16, #tpu.memory_space<vmem>>, %arg2: memref<48x16xbf16, #tpu.memory_space<vmem>>, %arg3: memref<1x16xf32, #tpu.memory_space<vmem>>, %arg4: memref<128x16xbf16, #tpu.memory_space<vmem>>) attributes {dimension_semantics = [#tpu.dimension_semantics<parallel>], iteration_bounds = array<i64: 1>, scalar_prefetch = 0 : i64, scratch_operands = 0 : i64, tpu.core_type = #tpu.core_type<tc>, window_params = [{transform_indices = @transform_0, window_bounds = array<i64: 128, 48>}, {pipeline_mode = #tpu.pipeline_mode<synchronous>, transform_indices = @transform_1, window_bounds = array<i64: 48, 16>}, {pipeline_mode = #tpu.pipeline_mode<synchronous>, transform_indices = @transform_2, window_bounds = array<i64: 1, 16>}, {transform_indices = @transform_3, window_bounds = array<i64: 128, 16>}]} {
    %c0 = arith.constant 0 : index
    %c0_0 = arith.constant 0 : index
    %0 = vector.load %arg1[%c0, %c0_0] : memref<128x48xbf16, #tpu.memory_space<vmem>>, vector<128x48xbf16>
    %c0_1 = arith.constant 0 : index
    %c0_2 = arith.constant 0 : index
    %1 = vector.load %arg2[%c0_1, %c0_2] : memref<48x16xbf16, #tpu.memory_space<vmem>>, vector<48x16xbf16>
    %cst = arith.constant dense<0.000000e+00> : vector<128x16xf32>
    %2 = tpu.matmul %0, %1, %cst {dimension_numbers = #tpu.dot_dimension_numbers<[1], [0], [0], [1], [0, 0, 1, 1], [], []>} : vector<128x48xbf16>, vector<48x16xbf16>, vector<128x16xf32> -> vector<128x16xf32>
    %c0_3 = arith.constant 0 : index
    %c0_4 = arith.constant 0 : index
    %3 = vector.load %arg3[%c0_3, %c0_4] : memref<1x16xf32, #tpu.memory_space<vmem>>, vector<1x16xf32>
    %4 = vector.broadcast %3 : vector<1x16xf32> to vector<128x16xf32>
    %5 = arith.addf %2, %4 : vector<128x16xf32>
    %cst_5 = arith.constant 0.000000e+00 : f32
    %6 = vector.broadcast %cst_5 : f32 to vector<128x16xf32>
    %7 = arith.maximumf %5, %6 : vector<128x16xf32>
    %8 = arith.truncf %7 : vector<128x16xf32> to vector<128x16xbf16>
    %c0_6 = arith.constant 0 : index
    %c0_7 = arith.constant 0 : index
    %9 = vector.load %arg4[%c0_6, %c0_7] : memref<128x16xbf16, #tpu.memory_space<vmem>>, vector<128x16xbf16>
    tpu.vector_store %arg4[%c0_6, %c0_7], %8 {strides = array<i32>} : memref<128x16xbf16, #tpu.memory_space<vmem>>, vector<128x16xbf16>,
    return
  }
  func.func @transform_0(%arg0: i32) -> (i32, i32) {
    %c0_i32 = arith.constant 0 : i32
    %c0_i32_0 = arith.constant 0 : i32
    return %arg0, %c0_i32 : i32, i32
  }
  func.func @transform_1(%arg0: i32) -> (i32, i32) {
    %c0_i32 = arith.constant 0 : i32
    %c0_i32_0 = arith.constant 0 : i32
    %c0_i32_1 = arith.constant 0 : i32
    return %c0_i32, %c0_i32_0 : i32, i32
  }
  func.func @transform_2(%arg0: i32) -> (i32, i32) {
    %c0_i32 = arith.constant 0 : i32
    %c0_i32_0 = arith.constant 0 : i32
    %c0_i32_1 = arith.constant 0 : i32
    return %c0_i32, %c0_i32_0 : i32, i32
  }
  func.func @transform_3(%arg0: i32) -> (i32, i32) {
    %c0_i32 = arith.constant 0 : i32
    %c0_i32_0 = arith.constant 0 : i32
    return %arg0, %c0_i32 : i32, i32
  }
}

module attributes {stable_mosaic.version = 11 : i64} {
  func.func @_gemm_kernel(%arg0: i32, %arg1: memref<32x256xbf16, #tpu.memory_space<vmem>>, %arg2: memref<256x32xbf16, #tpu.memory_space<vmem>>, %arg3: memref<1x32xf32, #tpu.memory_space<vmem>>, %arg4: memref<32x32xbf16, #tpu.memory_space<vmem>>) attributes {dimension_semantics = [#tpu.dimension_semantics<parallel>], iteration_bounds = array<i64: 1>, scalar_prefetch = 0 : i64, scratch_operands = 0 : i64, tpu.core_type = #tpu.core_type<tc>, window_params = [{transform_indices = @transform_0, window_bounds = array<i64: 32, 256>}, {pipeline_mode = #tpu.pipeline_mode<synchronous>, transform_indices = @transform_1, window_bounds = array<i64: 256, 32>}, {pipeline_mode = #tpu.pipeline_mode<synchronous>, transform_indices = @transform_2, window_bounds = array<i64: 1, 32>}, {transform_indices = @transform_3, window_bounds = array<i64: 32, 32>}]} {
    %c0 = arith.constant 0 : index
    %c0_0 = arith.constant 0 : index
    %0 = vector.load %arg1[%c0, %c0_0] : memref<32x256xbf16, #tpu.memory_space<vmem>>, vector<32x256xbf16>
    %c0_1 = arith.constant 0 : index
    %c0_2 = arith.constant 0 : index
    %1 = vector.load %arg2[%c0_1, %c0_2] : memref<256x32xbf16, #tpu.memory_space<vmem>>, vector<256x32xbf16>
    %cst = arith.constant dense<0.000000e+00> : vector<32x32xf32>
    %2 = tpu.matmul %0, %1, %cst {dimension_numbers = #tpu.dot_dimension_numbers<[1], [0], [0], [1], [0, 0, 1, 1], [], []>} : vector<32x256xbf16>, vector<256x32xbf16>, vector<32x32xf32> -> vector<32x32xf32>
    %c0_3 = arith.constant 0 : index
    %c0_4 = arith.constant 0 : index
    %3 = vector.load %arg3[%c0_3, %c0_4] : memref<1x32xf32, #tpu.memory_space<vmem>>, vector<1x32xf32>
    %4 = vector.broadcast %3 : vector<1x32xf32> to vector<32x32xf32>
    %5 = arith.addf %2, %4 : vector<32x32xf32>
    %cst_5 = arith.constant 0.000000e+00 : f32
    %6 = vector.broadcast %cst_5 : f32 to vector<32x32xf32>
    %7 = arith.maximumf %5, %6 : vector<32x32xf32>
    %8 = arith.truncf %7 : vector<32x32xf32> to vector<32x32xbf16>
    %c0_6 = arith.constant 0 : index
    %c0_7 = arith.constant 0 : index
    %9 = vector.load %arg4[%c0_6, %c0_7] : memref<32x32xbf16, #tpu.memory_space<vmem>>, vector<32x32xbf16>
    tpu.vector_store %arg4[%c0_6, %c0_7], %8 {strides = array<i32>} : memref<32x32xbf16, #tpu.memory_space<vmem>>, vector<32x32xbf16>,
    return
  }
  func.func @transform_0(%arg0: i32) -> (i32, i32) {
    %c0_i32 = arith.constant 0 : i32
    %c0_i32_0 = arith.constant 0 : i32
    return %arg0, %c0_i32 : i32, i32
  }
  func.func @transform_1(%arg0: i32) -> (i32, i32) {
    %c0_i32 = arith.constant 0 : i32
    %c0_i32_0 = arith.constant 0 : i32
    %c0_i32_1 = arith.constant 0 : i32
    return %c0_i32, %c0_i32_0 : i32, i32
  }
  func.func @transform_2(%arg0: i32) -> (i32, i32) {
    %c0_i32 = arith.constant 0 : i32
    %c0_i32_0 = arith.constant 0 : i32
    %c0_i32_1 = arith.constant 0 : i32
    return %c0_i32, %c0_i32_0 : i32, i32
  }
  func.func @transform_3(%arg0: i32) -> (i32, i32) {
    %c0_i32 = arith.constant 0 : i32
    %c0_i32_0 = arith.constant 0 : i32
    return %arg0, %c0_i32 : i32, i32
  }
}

module attributes {stable_mosaic.version = 11 : i64} {
  func.func @_gemm_kernel(%arg0: i32, %arg1: memref<32x288xbf16, #tpu.memory_space<vmem>>, %arg2: memref<288x32xbf16, #tpu.memory_space<vmem>>, %arg3: memref<1x32xf32, #tpu.memory_space<vmem>>, %arg4: memref<32x32xbf16, #tpu.memory_space<vmem>>) attributes {dimension_semantics = [#tpu.dimension_semantics<parallel>], iteration_bounds = array<i64: 1>, scalar_prefetch = 0 : i64, scratch_operands = 0 : i64, tpu.core_type = #tpu.core_type<tc>, window_params = [{transform_indices = @transform_0, window_bounds = array<i64: 32, 288>}, {pipeline_mode = #tpu.pipeline_mode<synchronous>, transform_indices = @transform_1, window_bounds = array<i64: 288, 32>}, {pipeline_mode = #tpu.pipeline_mode<synchronous>, transform_indices = @transform_2, window_bounds = array<i64: 1, 32>}, {transform_indices = @transform_3, window_bounds = array<i64: 32, 32>}]} {
    %c0 = arith.constant 0 : index
    %c0_0 = arith.constant 0 : index
    %0 = vector.load %arg1[%c0, %c0_0] : memref<32x288xbf16, #tpu.memory_space<vmem>>, vector<32x288xbf16>
    %c0_1 = arith.constant 0 : index
    %c0_2 = arith.constant 0 : index
    %1 = vector.load %arg2[%c0_1, %c0_2] : memref<288x32xbf16, #tpu.memory_space<vmem>>, vector<288x32xbf16>
    %cst = arith.constant dense<0.000000e+00> : vector<32x32xf32>
    %2 = tpu.matmul %0, %1, %cst {dimension_numbers = #tpu.dot_dimension_numbers<[1], [0], [0], [1], [0, 0, 1, 1], [], []>} : vector<32x288xbf16>, vector<288x32xbf16>, vector<32x32xf32> -> vector<32x32xf32>
    %c0_3 = arith.constant 0 : index
    %c0_4 = arith.constant 0 : index
    %3 = vector.load %arg3[%c0_3, %c0_4] : memref<1x32xf32, #tpu.memory_space<vmem>>, vector<1x32xf32>
    %4 = vector.broadcast %3 : vector<1x32xf32> to vector<32x32xf32>
    %5 = arith.addf %2, %4 : vector<32x32xf32>
    %cst_5 = arith.constant 0.000000e+00 : f32
    %6 = vector.broadcast %cst_5 : f32 to vector<32x32xf32>
    %7 = arith.maximumf %5, %6 : vector<32x32xf32>
    %8 = arith.truncf %7 : vector<32x32xf32> to vector<32x32xbf16>
    %c0_6 = arith.constant 0 : index
    %c0_7 = arith.constant 0 : index
    %9 = vector.load %arg4[%c0_6, %c0_7] : memref<32x32xbf16, #tpu.memory_space<vmem>>, vector<32x32xbf16>
    tpu.vector_store %arg4[%c0_6, %c0_7], %8 {strides = array<i32>} : memref<32x32xbf16, #tpu.memory_space<vmem>>, vector<32x32xbf16>,
    return
  }
  func.func @transform_0(%arg0: i32) -> (i32, i32) {
    %c0_i32 = arith.constant 0 : i32
    %c0_i32_0 = arith.constant 0 : i32
    return %arg0, %c0_i32 : i32, i32
  }
  func.func @transform_1(%arg0: i32) -> (i32, i32) {
    %c0_i32 = arith.constant 0 : i32
    %c0_i32_0 = arith.constant 0 : i32
    %c0_i32_1 = arith.constant 0 : i32
    return %c0_i32, %c0_i32_0 : i32, i32
  }
  func.func @transform_2(%arg0: i32) -> (i32, i32) {
    %c0_i32 = arith.constant 0 : i32
    %c0_i32_0 = arith.constant 0 : i32
    %c0_i32_1 = arith.constant 0 : i32
    return %c0_i32, %c0_i32_0 : i32, i32
  }
  func.func @transform_3(%arg0: i32) -> (i32, i32) {
    %c0_i32 = arith.constant 0 : i32
    %c0_i32_0 = arith.constant 0 : i32
    return %arg0, %c0_i32 : i32, i32
  }
}

module attributes {stable_mosaic.version = 11 : i64} {
  func.func @_vq_kernel(%arg0: i32, %arg1: memref<32x32xbf16, #tpu.memory_space<vmem>>, %arg2: memref<32x16xbf16, #tpu.memory_space<vmem>>, %arg3: memref<1x16xf32, #tpu.memory_space<vmem>>, %arg4: memref<128x16xf32, #tpu.memory_space<vmem>>, %arg5: memref<16x128xf32, #tpu.memory_space<vmem>>, %arg6: memref<1x128xf32, #tpu.memory_space<vmem>>, %arg7: memref<32x16xbf16, #tpu.memory_space<vmem>>, %arg8: memref<32x1xf32, #tpu.memory_space<vmem>>) attributes {dimension_semantics = [#tpu.dimension_semantics<parallel>], iteration_bounds = array<i64: 1>, scalar_prefetch = 0 : i64, scratch_operands = 0 : i64, tpu.core_type = #tpu.core_type<tc>, window_params = [{transform_indices = @transform_0, window_bounds = array<i64: 32, 32>}, {pipeline_mode = #tpu.pipeline_mode<synchronous>, transform_indices = @transform_1, window_bounds = array<i64: 32, 16>}, {pipeline_mode = #tpu.pipeline_mode<synchronous>, transform_indices = @transform_2, window_bounds = array<i64: 1, 16>}, {pipeline_mode = #tpu.pipeline_mode<synchronous>, transform_indices = @transform_3, window_bounds = array<i64: 128, 16>}, {pipeline_mode = #tpu.pipeline_mode<synchronous>, transform_indices = @transform_4, window_bounds = array<i64: 16, 128>}, {pipeline_mode = #tpu.pipeline_mode<synchronous>, transform_indices = @transform_5, window_bounds = array<i64: 1, 128>}, {transform_indices = @transform_6, window_bounds = array<i64: 32, 16>}, {transform_indices = @transform_7, window_bounds = array<i64: 32, 1>}]} {
    %c0 = arith.constant 0 : index
    %c0_0 = arith.constant 0 : index
    %0 = vector.load %arg1[%c0, %c0_0] : memref<32x32xbf16, #tpu.memory_space<vmem>>, vector<32x32xbf16>
    %c0_1 = arith.constant 0 : index
    %c0_2 = arith.constant 0 : index
    %1 = vector.load %arg2[%c0_1, %c0_2] : memref<32x16xbf16, #tpu.memory_space<vmem>>, vector<32x16xbf16>
    %cst = arith.constant dense<0.000000e+00> : vector<32x16xf32>
    %2 = tpu.matmul %0, %1, %cst {dimension_numbers = #tpu.dot_dimension_numbers<[1], [0], [0], [1], [0, 0, 1, 1], [], []>} : vector<32x32xbf16>, vector<32x16xbf16>, vector<32x16xf32> -> vector<32x16xf32>
    %c0_3 = arith.constant 0 : index
    %c0_4 = arith.constant 0 : index
    %3 = vector.load %arg3[%c0_3, %c0_4] : memref<1x16xf32, #tpu.memory_space<vmem>>, vector<1x16xf32>
    %4 = vector.broadcast %3 : vector<1x16xf32> to vector<32x16xf32>
    %5 = arith.addf %2, %4 : vector<32x16xf32>
    %c0_5 = arith.constant 0 : index
    %c0_6 = arith.constant 0 : index
    %6 = vector.load %arg5[%c0_5, %c0_6] : memref<16x128xf32, #tpu.memory_space<vmem>>, vector<16x128xf32>
    %cst_7 = arith.constant dense<0.000000e+00> : vector<32x128xf32>
    %7 = tpu.matmul %5, %6, %cst_7 {dimension_numbers = #tpu.dot_dimension_numbers<[1], [0], [0], [1], [0, 0, 1, 1], [], []>} : vector<32x16xf32>, vector<16x128xf32>, vector<32x128xf32> -> vector<32x128xf32>
    %c0_8 = arith.constant 0 : index
    %c0_9 = arith.constant 0 : index
    %8 = vector.load %arg6[%c0_8, %c0_9] : memref<1x128xf32, #tpu.memory_space<vmem>>, vector<1x128xf32>
    %cst_10 = arith.constant 2.000000e+00 : f32
    %9 = vector.broadcast %cst_10 : f32 to vector<32x128xf32>
    %10 = arith.mulf %9, %7 : vector<32x128xf32>
    %11 = vector.broadcast %8 : vector<1x128xf32> to vector<32x128xf32>
    %12 = arith.subf %11, %10 : vector<32x128xf32>
    %cst_11 = arith.constant dense<0x7F800000> : vector<32xf32>
    %13 = vector.multi_reduction <minimumf>, %12, %cst_11 [1] : vector<32x128xf32> to vector<32xf32>
    %14 = vector.shape_cast %13 : vector<32xf32> to vector<32x1xf32>
    %15 = tpu.iota {dimensions = array<i32: 1>} : vector<32x128xi32>
    %16 = vector.broadcast %14 : vector<32x1xf32> to vector<32x128xf32>
    %17 = arith.cmpf ole, %12, %16 : vector<32x128xf32>
    %c1073741824_i32 = arith.constant 1073741824 : i32
    %18 = vector.broadcast %c1073741824_i32 : i32 to vector<32x128xi32>
    %19 = arith.select %17, %15, %18 : vector<32x128xi1>, vector<32x128xi32>
    %cst_12 = arith.constant dense<2147483647> : vector<32xi32>
    %20 = vector.multi_reduction <minsi>, %19, %cst_12 [1] : vector<32x128xi32> to vector<32xi32>
    %21 = vector.shape_cast %20 : vector<32xi32> to vector<32x1xi32>
    %22 = vector.broadcast %21 : vector<32x1xi32> to vector<32x128xi32>
    %23 = arith.cmpi eq, %15, %22 : vector<32x128xi32>
    %24 = arith.extui %23 : vector<32x128xi1> to vector<32x128xi32>
    %25 = arith.sitofp %24 : vector<32x128xi32> to vector<32x128xf32>
    %c0_13 = arith.constant 0 : index
    %c0_14 = arith.constant 0 : index
    %26 = vector.load %arg4[%c0_13, %c0_14] : memref<128x16xf32, #tpu.memory_space<vmem>>, vector<128x16xf32>
    %cst_15 = arith.constant dense<0.000000e+00> : vector<32x16xf32>
    %27 = tpu.matmul %25, %26, %cst_15 {dimension_numbers = #tpu.dot_dimension_numbers<[1], [0], [0], [1], [0, 0, 1, 1], [], []>} : vector<32x128xf32>, vector<128x16xf32>, vector<32x16xf32> -> vector<32x16xf32>
    %28 = arith.subf %27, %5 : vector<32x16xf32>
    %29 = arith.mulf %28, %28 : vector<32x16xf32>
    %cst_16 = arith.constant dense<0.000000e+00> : vector<32xf32>
    %30 = vector.multi_reduction <add>, %29, %cst_16 [1] : vector<32x16xf32> to vector<32xf32>
    %31 = vector.shape_cast %30 : vector<32xf32> to vector<32x1xf32>
    %32 = arith.truncf %27 : vector<32x16xf32> to vector<32x16xbf16>
    %c0_17 = arith.constant 0 : index
    %c0_18 = arith.constant 0 : index
    %33 = vector.load %arg7[%c0_17, %c0_18] : memref<32x16xbf16, #tpu.memory_space<vmem>>, vector<32x16xbf16>
    tpu.vector_store %arg7[%c0_17, %c0_18], %32 {strides = array<i32>} : memref<32x16xbf16, #tpu.memory_space<vmem>>, vector<32x16xbf16>,
    %c0_19 = arith.constant 0 : index
    %c0_20 = arith.constant 0 : index
    %34 = vector.load %arg8[%c0_19, %c0_20] : memref<32x1xf32, #tpu.memory_space<vmem>>, vector<32x1xf32>
    tpu.vector_store %arg8[%c0_19, %c0_20], %31 {strides = array<i32>} : memref<32x1xf32, #tpu.memory_space<vmem>>, vector<32x1xf32>,
    return
  }
  func.func @transform_0(%arg0: i32) -> (i32, i32) {
    %c0_i32 = arith.constant 0 : i32
    %c0_i32_0 = arith.constant 0 : i32
    return %arg0, %c0_i32 : i32, i32
  }
  func.func @transform_1(%arg0: i32) -> (i32, i32) {
    %c0_i32 = arith.constant 0 : i32
    %c0_i32_0 = arith.constant 0 : i32
    %c0_i32_1 = arith.constant 0 : i32
    return %c0_i32, %c0_i32_0 : i32, i32
  }
  func.func @transform_2(%arg0: i32) -> (i32, i32) {
    %c0_i32 = arith.constant 0 : i32
    %c0_i32_0 = arith.constant 0 : i32
    %c0_i32_1 = arith.constant 0 : i32
    return %c0_i32, %c0_i32_0 : i32, i32
  }
  func.func @transform_3(%arg0: i32) -> (i32, i32) {
    %c0_i32 = arith.constant 0 : i32
    %c0_i32_0 = arith.constant 0 : i32
    %c0_i32_1 = arith.constant 0 : i32
    return %c0_i32, %c0_i32_0 : i32, i32
  }
  func.func @transform_4(%arg0: i32) -> (i32, i32) {
    %c0_i32 = arith.constant 0 : i32
    %c0_i32_0 = arith.constant 0 : i32
    %c0_i32_1 = arith.constant 0 : i32
    return %c0_i32, %c0_i32_0 : i32, i32
  }
  func.func @transform_5(%arg0: i32) -> (i32, i32) {
    %c0_i32 = arith.constant 0 : i32
    %c0_i32_0 = arith.constant 0 : i32
    %c0_i32_1 = arith.constant 0 : i32
    return %c0_i32, %c0_i32_0 : i32, i32
  }
  func.func @transform_6(%arg0: i32) -> (i32, i32) {
    %c0_i32 = arith.constant 0 : i32
    %c0_i32_0 = arith.constant 0 : i32
    return %arg0, %c0_i32 : i32, i32
  }
  func.func @transform_7(%arg0: i32) -> (i32, i32) {
    %c0_i32 = arith.constant 0 : i32
    %c0_i32_0 = arith.constant 0 : i32
    return %arg0, %c0_i32 : i32, i32
  }
}

module attributes {stable_mosaic.version = 11 : i64} {
  func.func @_resblock_kernel(%arg0: i32, %arg1: memref<32x288xbf16, #tpu.memory_space<vmem>>, %arg2: memref<288x16xbf16, #tpu.memory_space<vmem>>, %arg3: memref<1x16xf32, #tpu.memory_space<vmem>>, %arg4: memref<16x32xbf16, #tpu.memory_space<vmem>>, %arg5: memref<1x32xf32, #tpu.memory_space<vmem>>, %arg6: memref<32x32xbf16, #tpu.memory_space<vmem>>, %arg7: memref<32x32xbf16, #tpu.memory_space<vmem>>) attributes {dimension_semantics = [#tpu.dimension_semantics<parallel>], iteration_bounds = array<i64: 1>, scalar_prefetch = 0 : i64, scratch_operands = 0 : i64, tpu.core_type = #tpu.core_type<tc>, window_params = [{transform_indices = @transform_0, window_bounds = array<i64: 32, 288>}, {pipeline_mode = #tpu.pipeline_mode<synchronous>, transform_indices = @transform_1, window_bounds = array<i64: 288, 16>}, {pipeline_mode = #tpu.pipeline_mode<synchronous>, transform_indices = @transform_2, window_bounds = array<i64: 1, 16>}, {pipeline_mode = #tpu.pipeline_mode<synchronous>, transform_indices = @transform_3, window_bounds = array<i64: 16, 32>}, {pipeline_mode = #tpu.pipeline_mode<synchronous>, transform_indices = @transform_4, window_bounds = array<i64: 1, 32>}, {transform_indices = @transform_5, window_bounds = array<i64: 32, 32>}, {transform_indices = @transform_6, window_bounds = array<i64: 32, 32>}]} {
    %c0 = arith.constant 0 : index
    %c0_0 = arith.constant 0 : index
    %0 = vector.load %arg1[%c0, %c0_0] : memref<32x288xbf16, #tpu.memory_space<vmem>>, vector<32x288xbf16>
    %c0_1 = arith.constant 0 : index
    %c0_2 = arith.constant 0 : index
    %1 = vector.load %arg2[%c0_1, %c0_2] : memref<288x16xbf16, #tpu.memory_space<vmem>>, vector<288x16xbf16>
    %cst = arith.constant dense<0.000000e+00> : vector<32x16xf32>
    %2 = tpu.matmul %0, %1, %cst {dimension_numbers = #tpu.dot_dimension_numbers<[1], [0], [0], [1], [0, 0, 1, 1], [], []>} : vector<32x288xbf16>, vector<288x16xbf16>, vector<32x16xf32> -> vector<32x16xf32>
    %c0_3 = arith.constant 0 : index
    %c0_4 = arith.constant 0 : index
    %3 = vector.load %arg3[%c0_3, %c0_4] : memref<1x16xf32, #tpu.memory_space<vmem>>, vector<1x16xf32>
    %4 = vector.broadcast %3 : vector<1x16xf32> to vector<32x16xf32>
    %5 = arith.addf %2, %4 : vector<32x16xf32>
    %cst_5 = arith.constant 0.000000e+00 : f32
    %6 = vector.broadcast %cst_5 : f32 to vector<32x16xf32>
    %7 = arith.maximumf %5, %6 : vector<32x16xf32>
    %8 = arith.truncf %7 : vector<32x16xf32> to vector<32x16xbf16>
    %c0_6 = arith.constant 0 : index
    %c0_7 = arith.constant 0 : index
    %9 = vector.load %arg4[%c0_6, %c0_7] : memref<16x32xbf16, #tpu.memory_space<vmem>>, vector<16x32xbf16>
    %cst_8 = arith.constant dense<0.000000e+00> : vector<32x32xf32>
    %10 = tpu.matmul %8, %9, %cst_8 {dimension_numbers = #tpu.dot_dimension_numbers<[1], [0], [0], [1], [0, 0, 1, 1], [], []>} : vector<32x16xbf16>, vector<16x32xbf16>, vector<32x32xf32> -> vector<32x32xf32>
    %c0_9 = arith.constant 0 : index
    %c0_10 = arith.constant 0 : index
    %11 = vector.load %arg5[%c0_9, %c0_10] : memref<1x32xf32, #tpu.memory_space<vmem>>, vector<1x32xf32>
    %12 = vector.broadcast %11 : vector<1x32xf32> to vector<32x32xf32>
    %13 = arith.addf %10, %12 : vector<32x32xf32>
    %c0_11 = arith.constant 0 : index
    %c0_12 = arith.constant 0 : index
    %14 = vector.load %arg6[%c0_11, %c0_12] : memref<32x32xbf16, #tpu.memory_space<vmem>>, vector<32x32xbf16>
    %15 = arith.extf %14 : vector<32x32xbf16> to vector<32x32xf32>
    %16 = arith.addf %13, %15 : vector<32x32xf32>
    %cst_13 = arith.constant 0.000000e+00 : f32
    %17 = vector.broadcast %cst_13 : f32 to vector<32x32xf32>
    %18 = arith.maximumf %16, %17 : vector<32x32xf32>
    %19 = arith.truncf %18 : vector<32x32xf32> to vector<32x32xbf16>
    %c0_14 = arith.constant 0 : index
    %c0_15 = arith.constant 0 : index
    %20 = vector.load %arg7[%c0_14, %c0_15] : memref<32x32xbf16, #tpu.memory_space<vmem>>, vector<32x32xbf16>
    tpu.vector_store %arg7[%c0_14, %c0_15], %19 {strides = array<i32>} : memref<32x32xbf16, #tpu.memory_space<vmem>>, vector<32x32xbf16>,
    return
  }
  func.func @transform_0(%arg0: i32) -> (i32, i32) {
    %c0_i32 = arith.constant 0 : i32
    %c0_i32_0 = arith.constant 0 : i32
    return %arg0, %c0_i32 : i32, i32
  }
  func.func @transform_1(%arg0: i32) -> (i32, i32) {
    %c0_i32 = arith.constant 0 : i32
    %c0_i32_0 = arith.constant 0 : i32
    %c0_i32_1 = arith.constant 0 : i32
    return %c0_i32, %c0_i32_0 : i32, i32
  }
  func.func @transform_2(%arg0: i32) -> (i32, i32) {
    %c0_i32 = arith.constant 0 : i32
    %c0_i32_0 = arith.constant 0 : i32
    %c0_i32_1 = arith.constant 0 : i32
    return %c0_i32, %c0_i32_0 : i32, i32
  }
  func.func @transform_3(%arg0: i32) -> (i32, i32) {
    %c0_i32 = arith.constant 0 : i32
    %c0_i32_0 = arith.constant 0 : i32
    %c0_i32_1 = arith.constant 0 : i32
    return %c0_i32, %c0_i32_0 : i32, i32
  }
  func.func @transform_4(%arg0: i32) -> (i32, i32) {
    %c0_i32 = arith.constant 0 : i32
    %c0_i32_0 = arith.constant 0 : i32
    %c0_i32_1 = arith.constant 0 : i32
    return %c0_i32, %c0_i32_0 : i32, i32
  }
  func.func @transform_5(%arg0: i32) -> (i32, i32) {
    %c0_i32 = arith.constant 0 : i32
    %c0_i32_0 = arith.constant 0 : i32
    return %arg0, %c0_i32 : i32, i32
  }
  func.func @transform_6(%arg0: i32) -> (i32, i32) {
    %c0_i32 = arith.constant 0 : i32
    %c0_i32_0 = arith.constant 0 : i32
    return %arg0, %c0_i32 : i32, i32
  }
}

module attributes {stable_mosaic.version = 11 : i64} {
  func.func @_gemm_kernel(%arg0: i32, %arg1: memref<32x144xbf16, #tpu.memory_space<vmem>>, %arg2: memref<144x32xbf16, #tpu.memory_space<vmem>>, %arg3: memref<1x32xf32, #tpu.memory_space<vmem>>, %arg4: memref<32x32xbf16, #tpu.memory_space<vmem>>) attributes {dimension_semantics = [#tpu.dimension_semantics<parallel>], iteration_bounds = array<i64: 1>, scalar_prefetch = 0 : i64, scratch_operands = 0 : i64, tpu.core_type = #tpu.core_type<tc>, window_params = [{transform_indices = @transform_0, window_bounds = array<i64: 32, 144>}, {pipeline_mode = #tpu.pipeline_mode<synchronous>, transform_indices = @transform_1, window_bounds = array<i64: 144, 32>}, {pipeline_mode = #tpu.pipeline_mode<synchronous>, transform_indices = @transform_2, window_bounds = array<i64: 1, 32>}, {transform_indices = @transform_3, window_bounds = array<i64: 32, 32>}]} {
    %c0 = arith.constant 0 : index
    %c0_0 = arith.constant 0 : index
    %0 = vector.load %arg1[%c0, %c0_0] : memref<32x144xbf16, #tpu.memory_space<vmem>>, vector<32x144xbf16>
    %c0_1 = arith.constant 0 : index
    %c0_2 = arith.constant 0 : index
    %1 = vector.load %arg2[%c0_1, %c0_2] : memref<144x32xbf16, #tpu.memory_space<vmem>>, vector<144x32xbf16>
    %cst = arith.constant dense<0.000000e+00> : vector<32x32xf32>
    %2 = tpu.matmul %0, %1, %cst {dimension_numbers = #tpu.dot_dimension_numbers<[1], [0], [0], [1], [0, 0, 1, 1], [], []>} : vector<32x144xbf16>, vector<144x32xbf16>, vector<32x32xf32> -> vector<32x32xf32>
    %c0_3 = arith.constant 0 : index
    %c0_4 = arith.constant 0 : index
    %3 = vector.load %arg3[%c0_3, %c0_4] : memref<1x32xf32, #tpu.memory_space<vmem>>, vector<1x32xf32>
    %4 = vector.broadcast %3 : vector<1x32xf32> to vector<32x32xf32>
    %5 = arith.addf %2, %4 : vector<32x32xf32>
    %cst_5 = arith.constant 0.000000e+00 : f32
    %6 = vector.broadcast %cst_5 : f32 to vector<32x32xf32>
    %7 = arith.maximumf %5, %6 : vector<32x32xf32>
    %8 = arith.truncf %7 : vector<32x32xf32> to vector<32x32xbf16>
    %c0_6 = arith.constant 0 : index
    %c0_7 = arith.constant 0 : index
    %9 = vector.load %arg4[%c0_6, %c0_7] : memref<32x32xbf16, #tpu.memory_space<vmem>>, vector<32x32xbf16>
    tpu.vector_store %arg4[%c0_6, %c0_7], %8 {strides = array<i32>} : memref<32x32xbf16, #tpu.memory_space<vmem>>, vector<32x32xbf16>,
    return
  }
  func.func @transform_0(%arg0: i32) -> (i32, i32) {
    %c0_i32 = arith.constant 0 : i32
    %c0_i32_0 = arith.constant 0 : i32
    return %arg0, %c0_i32 : i32, i32
  }
  func.func @transform_1(%arg0: i32) -> (i32, i32) {
    %c0_i32 = arith.constant 0 : i32
    %c0_i32_0 = arith.constant 0 : i32
    %c0_i32_1 = arith.constant 0 : i32
    return %c0_i32, %c0_i32_0 : i32, i32
  }
  func.func @transform_2(%arg0: i32) -> (i32, i32) {
    %c0_i32 = arith.constant 0 : i32
    %c0_i32_0 = arith.constant 0 : i32
    %c0_i32_1 = arith.constant 0 : i32
    return %c0_i32, %c0_i32_0 : i32, i32
  }
  func.func @transform_3(%arg0: i32) -> (i32, i32) {
    %c0_i32 = arith.constant 0 : i32
    %c0_i32_0 = arith.constant 0 : i32
    return %arg0, %c0_i32 : i32, i32
  }
}

module attributes {stable_mosaic.version = 11 : i64} {
  func.func @_gemm_kernel(%arg0: i32, %arg1: memref<32x288xbf16, #tpu.memory_space<vmem>>, %arg2: memref<288x64xbf16, #tpu.memory_space<vmem>>, %arg3: memref<1x64xf32, #tpu.memory_space<vmem>>, %arg4: memref<32x64xbf16, #tpu.memory_space<vmem>>) attributes {dimension_semantics = [#tpu.dimension_semantics<parallel>], iteration_bounds = array<i64: 1>, scalar_prefetch = 0 : i64, scratch_operands = 0 : i64, tpu.core_type = #tpu.core_type<tc>, window_params = [{transform_indices = @transform_0, window_bounds = array<i64: 32, 288>}, {pipeline_mode = #tpu.pipeline_mode<synchronous>, transform_indices = @transform_1, window_bounds = array<i64: 288, 64>}, {pipeline_mode = #tpu.pipeline_mode<synchronous>, transform_indices = @transform_2, window_bounds = array<i64: 1, 64>}, {transform_indices = @transform_3, window_bounds = array<i64: 32, 64>}]} {
    %c0 = arith.constant 0 : index
    %c0_0 = arith.constant 0 : index
    %0 = vector.load %arg1[%c0, %c0_0] : memref<32x288xbf16, #tpu.memory_space<vmem>>, vector<32x288xbf16>
    %c0_1 = arith.constant 0 : index
    %c0_2 = arith.constant 0 : index
    %1 = vector.load %arg2[%c0_1, %c0_2] : memref<288x64xbf16, #tpu.memory_space<vmem>>, vector<288x64xbf16>
    %cst = arith.constant dense<0.000000e+00> : vector<32x64xf32>
    %2 = tpu.matmul %0, %1, %cst {dimension_numbers = #tpu.dot_dimension_numbers<[1], [0], [0], [1], [0, 0, 1, 1], [], []>} : vector<32x288xbf16>, vector<288x64xbf16>, vector<32x64xf32> -> vector<32x64xf32>
    %c0_3 = arith.constant 0 : index
    %c0_4 = arith.constant 0 : index
    %3 = vector.load %arg3[%c0_3, %c0_4] : memref<1x64xf32, #tpu.memory_space<vmem>>, vector<1x64xf32>
    %4 = vector.broadcast %3 : vector<1x64xf32> to vector<32x64xf32>
    %5 = arith.addf %2, %4 : vector<32x64xf32>
    %cst_5 = arith.constant 0.000000e+00 : f32
    %6 = vector.broadcast %cst_5 : f32 to vector<32x64xf32>
    %7 = arith.maximumf %5, %6 : vector<32x64xf32>
    %8 = arith.truncf %7 : vector<32x64xf32> to vector<32x64xbf16>
    %c0_6 = arith.constant 0 : index
    %c0_7 = arith.constant 0 : index
    %9 = vector.load %arg4[%c0_6, %c0_7] : memref<32x64xbf16, #tpu.memory_space<vmem>>, vector<32x64xbf16>
    tpu.vector_store %arg4[%c0_6, %c0_7], %8 {strides = array<i32>} : memref<32x64xbf16, #tpu.memory_space<vmem>>, vector<32x64xbf16>,
    return
  }
  func.func @transform_0(%arg0: i32) -> (i32, i32) {
    %c0_i32 = arith.constant 0 : i32
    %c0_i32_0 = arith.constant 0 : i32
    return %arg0, %c0_i32 : i32, i32
  }
  func.func @transform_1(%arg0: i32) -> (i32, i32) {
    %c0_i32 = arith.constant 0 : i32
    %c0_i32_0 = arith.constant 0 : i32
    %c0_i32_1 = arith.constant 0 : i32
    return %c0_i32, %c0_i32_0 : i32, i32
  }
  func.func @transform_2(%arg0: i32) -> (i32, i32) {
    %c0_i32 = arith.constant 0 : i32
    %c0_i32_0 = arith.constant 0 : i32
    %c0_i32_1 = arith.constant 0 : i32
    return %c0_i32, %c0_i32_0 : i32, i32
  }
  func.func @transform_3(%arg0: i32) -> (i32, i32) {
    %c0_i32 = arith.constant 0 : i32
    %c0_i32_0 = arith.constant 0 : i32
    return %arg0, %c0_i32 : i32, i32
  }
}

module attributes {stable_mosaic.version = 11 : i64} {
  func.func @_gemm_kernel(%arg0: i32, %arg1: memref<128x144xbf16, #tpu.memory_space<vmem>>, %arg2: memref<144x12xbf16, #tpu.memory_space<vmem>>, %arg3: memref<1x12xf32, #tpu.memory_space<vmem>>, %arg4: memref<128x12xf32, #tpu.memory_space<vmem>>) attributes {dimension_semantics = [#tpu.dimension_semantics<parallel>], iteration_bounds = array<i64: 1>, scalar_prefetch = 0 : i64, scratch_operands = 0 : i64, tpu.core_type = #tpu.core_type<tc>, window_params = [{transform_indices = @transform_0, window_bounds = array<i64: 128, 144>}, {pipeline_mode = #tpu.pipeline_mode<synchronous>, transform_indices = @transform_1, window_bounds = array<i64: 144, 12>}, {pipeline_mode = #tpu.pipeline_mode<synchronous>, transform_indices = @transform_2, window_bounds = array<i64: 1, 12>}, {transform_indices = @transform_3, window_bounds = array<i64: 128, 12>}]} {
    %c0 = arith.constant 0 : index
    %c0_0 = arith.constant 0 : index
    %0 = vector.load %arg1[%c0, %c0_0] : memref<128x144xbf16, #tpu.memory_space<vmem>>, vector<128x144xbf16>
    %c0_1 = arith.constant 0 : index
    %c0_2 = arith.constant 0 : index
    %1 = vector.load %arg2[%c0_1, %c0_2] : memref<144x12xbf16, #tpu.memory_space<vmem>>, vector<144x12xbf16>
    %cst = arith.constant dense<0.000000e+00> : vector<128x12xf32>
    %2 = tpu.matmul %0, %1, %cst {dimension_numbers = #tpu.dot_dimension_numbers<[1], [0], [0], [1], [0, 0, 1, 1], [], []>} : vector<128x144xbf16>, vector<144x12xbf16>, vector<128x12xf32> -> vector<128x12xf32>
    %c0_3 = arith.constant 0 : index
    %c0_4 = arith.constant 0 : index
    %3 = vector.load %arg3[%c0_3, %c0_4] : memref<1x12xf32, #tpu.memory_space<vmem>>, vector<1x12xf32>
    %4 = vector.broadcast %3 : vector<1x12xf32> to vector<128x12xf32>
    %5 = arith.addf %2, %4 : vector<128x12xf32>
    %cst_5 = arith.constant 0.000000e+00 : f32
    %6 = vector.broadcast %cst_5 : f32 to vector<128x12xf32>
    %7 = arith.maximumf %5, %6 : vector<128x12xf32>
    %c0_6 = arith.constant 0 : index
    %c0_7 = arith.constant 0 : index
    %8 = vector.load %arg4[%c0_6, %c0_7] : memref<128x12xf32, #tpu.memory_space<vmem>>, vector<128x12xf32>
    tpu.vector_store %arg4[%c0_6, %c0_7], %7 {strides = array<i32>} : memref<128x12xf32, #tpu.memory_space<vmem>>, vector<128x12xf32>,
    return
  }
  func.func @transform_0(%arg0: i32) -> (i32, i32) {
    %c0_i32 = arith.constant 0 : i32
    %c0_i32_0 = arith.constant 0 : i32
    return %arg0, %c0_i32 : i32, i32
  }
  func.func @transform_1(%arg0: i32) -> (i32, i32) {
    %c0_i32 = arith.constant 0 : i32
    %c0_i32_0 = arith.constant 0 : i32
    %c0_i32_1 = arith.constant 0 : i32
    return %c0_i32, %c0_i32_0 : i32, i32
  }
  func.func @transform_2(%arg0: i32) -> (i32, i32) {
    %c0_i32 = arith.constant 0 : i32
    %c0_i32_0 = arith.constant 0 : i32
    %c0_i32_1 = arith.constant 0 : i32
    return %c0_i32, %c0_i32_0 : i32, i32
  }
  func.func @transform_3(%arg0: i32) -> (i32, i32) {
    %c0_i32 = arith.constant 0 : i32
    %c0_i32_0 = arith.constant 0 : i32
    return %arg0, %c0_i32 : i32, i32
  }
}

</mosaic_0001>

<bundles_post_ra>
// kernel: vqvae_forward.11
= control target key start
LH: loop header
LB: loop body
LE: loop exit
PB: predicated region body
PF: predicated region fallthrough
CT: control target
= control target key end

     0   :  { %vm102_vm0 = vcmask 392192   ;;  %vm304_vm1 = vcmask 125952   ;;  %s555_s1 = inlined_call_operand.vmem [shape: bf16[48,16], index: 1, kind: input, shape index: {}]   ;;  %s556_s0 = inlined_call_operand.vmem [shape: bf16[128,48], index: 0, kind: input, shape index: {}]   ;;  %s557_s2 = inlined_call_operand.vmem [shape: f32[1,16], index: 2, kind: input, shape index: {}]   ;;  %s558_s3 = inlined_call_operand.vmem [shape: bf16[128,16], index: 3, kind: output, shape index: {}]  }
   0x1   :  { %v416_v0 = vld [vmem:[%s555_s1] sm:$0xff]   ;;  %v417_v1 = vld [vmem:[%s555_s1 + $0x8] sm:$0xff]   ;;  %v418_v2 = vld [vmem:[%s555_s1 + $0x10] sm:$0xff]  }
   0x2   :  { %388 = vmatprep.subr.bf16.mxu0 %v416_v0  ;;  %410 = vmatprep.subr.bf16.mxu1 %v416_v0  ;;  %v419_v3 = vld [vmem:[%s556_s0] sm:$0xff]   ;;  %v421_v5 = vld [vmem:[%s556_s0 + $0x8] sm:$0xff]   ;;  %v423_v7 = vld [vmem:[%s556_s0 + $0x10] sm:$0xff]  }
   0x3   :  { %389 = vmatpush3.bf16.msra.mxu0 %v416_v0  ;;  %413 = vmatpush3.bf16.msra.mxu1 %v416_v0  ;;  %v420_v4 = vld [vmem:[%s556_s0 + $0x20] sm:$0xff]   ;;  %v422_v6 = vld [vmem:[%s556_s0 + $0x28] sm:$0xff]   ;;  %v424_v8 = vld [vmem:[%s556_s0 + $0x30] sm:$0xff]  }
   0x4   :  { %390 = vmatprep.subr.bf16.mxu0 %v417_v1  ;;  %411 = vmatprep.subr.bf16.mxu1 %v417_v1  ;;  %v425_v9 = vld [vmem:[%s556_s0 + $0x18] sm:$0xff]   ;;  %v325_v11 = vld [vmem:[%s557_s2] ss:$0 sm:$0xff] }
   0x5   :  { %394 = vmatprep.mubr.msk.bf16.mxu0 %vm102_vm0, %v419_v3  ;;  %402 = vmatprep.mubr.msk.bf16.mxu1 %vm102_vm0, %v420_v4  ;;  %v426_v10 = vld [vmem:[%s556_s0 + $0x38] sm:$0xff]  }
   0x7   :  { %391 = vmatpush3.bf16.msra.mxu0 %v417_v1  ;;  %414 = vmatpush3.bf16.msra.mxu1 %v417_v1 }
   0x8   :  { %392 = vmatprep.subr.bf16.mxu0 %v418_v2  ;;  %412 = vmatprep.subr.bf16.mxu1 %v418_v2 }
   0xb   :  { %393 = vmatpush3.bf16.msra.mxu0 %v418_v2  ;;  %415 = vmatpush3.bf16.msra.mxu1 %v418_v2 }
   0xe   :  { %395 = vmatmul.mubr.msk.bf16.vlgmr.msra.gmra.mrb[0].mxu0 %vm102_vm0, %v421_v5  ;;  %403 = vmatmul.mubr.msk.bf16.vlgmr.msra.gmra.mrb[0].mxu1 %vm102_vm0, %v422_v6 }
   0xf   :  { %398 = vmatprep.mubr.msk.bf16.mxu0 %vm102_vm0, %v423_v7  ;;  %406 = vmatprep.mubr.msk.bf16.mxu1 %vm102_vm0, %v424_v8 }
  0x16   :  { %399 = vmatmul.mubr.msk.bf16.gmra.mrb[4].mxu0 %vm102_vm0, %v425_v9  ;;  %407 = vmatmul.mubr.msk.bf16.gmra.mrb[4].mxu1 %vm102_vm0, %v426_v10 }
  0xe1   :  { %v396_v12 = vpop.f32.mrb[0].mxu0  ;;  %v404_v13 = vpop.f32.mrb[0].mxu1 }
  0xe2   :  { %v170_v14 = vadd.f32 %v396_v12, %v325_v11  ;;  %v202_v15 = vadd.f32 %v404_v13, %v325_v11  ;;  %v161_v16 = vpop.f32.mrb[1].mxu0  ;;  %v193_v17 = vpop.f32.mrb[1].mxu1 }
  0xe3   :  { %v162_v18 = vadd.f32 %v325_v11, %v161_v16  ;;  %v194_v19 = vadd.f32 %v325_v11, %v193_v17  ;;  %v397_v20 = vpop.f32.mrb[2].mxu0  ;;  %v405_v21 = vpop.f32.mrb[2].mxu1 }
  0xe4   :  { %v226_v22 = vmax.f32 %v170_v14, 0.0  ;;  %v234_v23 = vmax.f32 %v202_v15, 0.0  ;;  %v173_v24 = vadd.f32 %v397_v20, %v325_v11  ;;  %v205_v25 = vadd.f32 %v405_v21, %v325_v11  ;;  %v164_v26 = vpop.f32.mrb[3].mxu0  ;;  %v196_v27 = vpop.f32.mrb[3].mxu1 }
  0xe5   :  { %v224_v28 = vmax.f32 %v162_v18, 0.0  ;;  %v232_v29 = vmax.f32 %v194_v19, 0.0  ;;  %v165_v30 = vadd.f32 %v325_v11, %v164_v26  ;;  %v197_v31 = vadd.f32 %v325_v11, %v196_v27 }
  0xe6   :  { %v363_v32 = vpack.c.bf16 %v226_v22, %v226_v22  ;;  %v371_v33 = vpack.c.bf16 %v234_v23, %v234_v23  ;;  %v227_v34 = vmax.f32 %v173_v24, 0.0  ;;  %v235_v35 = vmax.f32 %v205_v25, 0.0 }
  0xe7   :  { %v361_v36 = vpack.c.bf16 %v224_v28, %v224_v28  ;;  %v369_v37 = vpack.c.bf16 %v232_v29, %v232_v29  ;;  %v225_v38 = vmax.f32 %v165_v30, 0.0  ;;  %v233_v39 = vmax.f32 %v197_v31, 0.0 }
  0xe8   :  { %307 = vst.msk [vmem:[%s558_s3 + $0x8] sm:$0xf] %vm304_vm1, %v363_v32  ;;  %315 = vst.msk [vmem:[%s558_s3 + $0x28] sm:$0xf] %vm304_vm1, %v371_v33  ;;  %v364_v40 = vpack.c.bf16 %v227_v34, %v227_v34  ;;  %v372_v41 = vpack.c.bf16 %v235_v35, %v235_v35 }
  0xe9   :  { %305 = vst.msk [vmem:[%s558_s3] sm:$0xf] %vm304_vm1, %v361_v36  ;;  %313 = vst.msk [vmem:[%s558_s3 + $0x20] sm:$0xf] %vm304_vm1, %v369_v37  ;;  %v362_v42 = vpack.c.bf16 %v225_v38, %v225_v38  ;;  %v370_v43 = vpack.c.bf16 %v233_v39, %v233_v39  ;;  %v400_v44 = vpop.f32.mrb[4].mxu0  ;;  %v408_v45 = vpop.f32.mrb[4].mxu1 }
  0xea   :  { %308 = vst.msk [vmem:[%s558_s3 + $0xc] sm:$0xf] %vm304_vm1, %v364_v40  ;;  %316 = vst.msk [vmem:[%s558_s3 + $0x2c] sm:$0xf] %vm304_vm1, %v372_v41  ;;  %v186_v46 = vadd.f32 %v400_v44, %v325_v11  ;;  %v218_v47 = vadd.f32 %v408_v45, %v325_v11  ;;  %v177_v48 = vpop.f32.mrb[5].mxu0  ;;  %v209_v49 = vpop.f32.mrb[5].mxu1 }
  0xeb   :  { %306 = vst.msk [vmem:[%s558_s3 + $0x4] sm:$0xf] %vm304_vm1, %v362_v42  ;;  %314 = vst.msk [vmem:[%s558_s3 + $0x24] sm:$0xf] %vm304_vm1, %v370_v43  ;;  %v178_v50 = vadd.f32 %v325_v11, %v177_v48  ;;  %v210_v51 = vadd.f32 %v325_v11, %v209_v49  ;;  %v401_v52 = vpop.f32.mrb[6].mxu0  ;;  %v409_v53 = vpop.f32.mrb[6].mxu1 }
  0xec   :  { %v230_v54 = vmax.f32 %v186_v46, 0.0  ;;  %v238_v55 = vmax.f32 %v218_v47, 0.0  ;;  %v189_v56 = vadd.f32 %v401_v52, %v325_v11  ;;  %v221_v57 = vadd.f32 %v409_v53, %v325_v11  ;;  %v180_v58 = vpop.f32.mrb[7].mxu0  ;;  %v212_v59 = vpop.f32.mrb[7].mxu1 }
  0xed   :  { %v228_v60 = vmax.f32 %v178_v50, 0.0  ;;  %v236_v61 = vmax.f32 %v210_v51, 0.0  ;;  %v181_v62 = vadd.f32 %v325_v11, %v180_v58  ;;  %v213_v63 = vadd.f32 %v325_v11, %v212_v59 }
  0xee   :  { %v367_v0 = vpack.c.bf16 %v230_v54, %v230_v54  ;;  %v375_v1 = vpack.c.bf16 %v238_v55, %v238_v55  ;;  %v231_v2 = vmax.f32 %v189_v56, 0.0  ;;  %v239_v3 = vmax.f32 %v221_v57, 0.0 }
  0xef   :  { %v365_v4 = vpack.c.bf16 %v228_v60, %v228_v60  ;;  %v373_v5 = vpack.c.bf16 %v236_v61, %v236_v61  ;;  %v229_v6 = vmax.f32 %v181_v62, 0.0  ;;  %v237_v7 = vmax.f32 %v213_v63, 0.0 }
  0xf0   :  { %311 = vst.msk [vmem:[%s558_s3 + $0x18] sm:$0xf] %vm304_vm1, %v367_v0  ;;  %319 = vst.msk [vmem:[%s558_s3 + $0x38] sm:$0xf] %vm304_vm1, %v375_v1  ;;  %v368_v8 = vpack.c.bf16 %v231_v2, %v231_v2  ;;  %v376_v9 = vpack.c.bf16 %v239_v3, %v239_v3 }
  0xf1   :  { %309 = vst.msk [vmem:[%s558_s3 + $0x10] sm:$0xf] %vm304_vm1, %v365_v4  ;;  %317 = vst.msk [vmem:[%s558_s3 + $0x30] sm:$0xf] %vm304_vm1, %v373_v5  ;;  %v366_v10 = vpack.c.bf16 %v229_v6, %v229_v6  ;;  %v374_v11 = vpack.c.bf16 %v237_v7, %v237_v7 }
  0xf2   :  { %312 = vst.msk [vmem:[%s558_s3 + $0x1c] sm:$0xf] %vm304_vm1, %v368_v8  ;;  %320 = vst.msk [vmem:[%s558_s3 + $0x3c] sm:$0xf] %vm304_vm1, %v376_v9 }
  0xf3   :  { %310 = vst.msk [vmem:[%s558_s3 + $0x14] sm:$0xf] %vm304_vm1, %v366_v10  ;;  %318 = vst.msk [vmem:[%s558_s3 + $0x34] sm:$0xf] %vm304_vm1, %v374_v11 }

// kernel: vqvae_forward.12
= control target key start
LH: loop header
LB: loop body
LE: loop exit
PB: predicated region body
PF: predicated region fallthrough
CT: control target
= control target key end

     0   :  { %vm243_vm0 = vcmask 257024   ;;  %s442_s1 = inlined_call_operand.vmem [shape: bf16[256,32], index: 1, kind: input, shape index: {}]   ;;  %s443_s0 = inlined_call_operand.vmem [shape: bf16[32,256], index: 0, kind: input, shape index: {}]   ;;  %s444_s2 = inlined_call_operand.vmem [shape: f32[1,32], index: 2, kind: input, shape index: {}]   ;;  %s445_s3 = inlined_call_operand.vmem [shape: bf16[32,32], index: 3, kind: output, shape index: {}]  }
   0x1   :  { %v325_v0 = vld [vmem:[%s442_s1 + $0x40] sm:$0xff]   ;;  %v327_v2 = vld [vmem:[%s442_s1 + $0x48] sm:$0xff]   ;;  %v329_v4 = vld [vmem:[%s442_s1 + $0x50] sm:$0xff]  }
   0x2   :  { %v326_v1 = vld [vmem:[%s442_s1] sm:$0xff]   ;;  %281 = vmatprep.subr.bf16.mxu0 %v325_v0  ;;  %309 = vmatprep.subr.bf16.mxu1 %v325_v0  ;;  %v328_v3 = vld [vmem:[%s442_s1 + $0x8] sm:$0xff]   ;;  %v330_v5 = vld [vmem:[%s442_s1 + $0x10] sm:$0xff]  }
   0x3   :  { %282 = vmatpush3.bf16.msra.mxu0 %v326_v1  ;;  %317 = vmatpush3.bf16.msra.mxu1 %v326_v1  ;;  %v331_v6 = vld [vmem:[%s442_s1 + $0x58] sm:$0xff]   ;;  %v333_v8 = vld [vmem:[%s442_s1 + $0x60] sm:$0xff]   ;;  %v335_v10 = vld [vmem:[%s442_s1 + $0x68] sm:$0xff]  }
   0x4   :  { %283 = vmatprep.subr.bf16.mxu0 %v327_v2  ;;  %310 = vmatprep.subr.bf16.mxu1 %v327_v2  ;;  %v332_v7 = vld [vmem:[%s442_s1 + $0x18] sm:$0xff]   ;;  %v334_v9 = vld [vmem:[%s442_s1 + $0x20] sm:$0xff]   ;;  %v336_v13 = vld [vmem:[%s442_s1 + $0x28] sm:$0xff]  }
   0x5   :  { %v343_v11 = vld [vmem:[%s443_s0 + $0x4] ss:$8 sps:$4 sm:$0xff]   ;;  %v346_v12 = vld [vmem:[%s443_s0 + $0x14] ss:$8 sps:$4 sm:$0xff]   ;;  %v341_v18 = vld [vmem:[%s443_s0] ss:$8 sps:$4 sm:$0xff]  }
   0x6   :  { %v337_v14 = vld [vmem:[%s442_s1 + $0x70] sm:$0xff]   ;;  %206 = vmatprep.mubr.bf16.mxu0 %v343_v11  ;;  %214 = vmatprep.mubr.bf16.mxu1 %v346_v12  ;;  %v339_v16 = vld [vmem:[%s442_s1 + $0x78] sm:$0xff]   ;;  %v252_v22 = vld [vmem:[%s444_s2] ss:$0 sm:$0xff] }
   0x7   :  { %284 = vmatpush3.bf16.msra.mxu0 %v328_v3  ;;  %318 = vmatpush3.bf16.msra.mxu1 %v328_v3  ;;  %v338_v15 = vld [vmem:[%s442_s1 + $0x30] sm:$0xff]   ;;  %v340_v17 = vld [vmem:[%s442_s1 + $0x38] sm:$0xff]  }
   0x8   :  { %285 = vmatprep.subr.bf16.mxu0 %v329_v4  ;;  %311 = vmatprep.subr.bf16.mxu1 %v329_v4  ;;  %v344_v19 = vld [vmem:[%s443_s0 + $0x10] ss:$8 sps:$4 sm:$0xff]  }
   0xb   :  { %286 = vmatpush3.bf16.msra.mxu0 %v330_v5  ;;  %319 = vmatpush3.bf16.msra.mxu1 %v330_v5 }
   0xc   :  { %287 = vmatprep.subr.bf16.mxu0 %v331_v6  ;;  %312 = vmatprep.subr.bf16.mxu1 %v331_v6 }
   0xf   :  { %288 = vmatpush3.bf16.msra.mxu0 %v332_v7  ;;  %320 = vmatpush3.bf16.msra.mxu1 %v332_v7 }
  0x10   :  { %289 = vmatprep.subr.bf16.mxu0 %v333_v8  ;;  %313 = vmatprep.subr.bf16.mxu1 %v333_v8 }
  0x13   :  { %290 = vmatpush3.bf16.msra.mxu0 %v334_v9  ;;  %321 = vmatpush3.bf16.msra.mxu1 %v334_v9 }
  0x14   :  { %291 = vmatprep.subr.bf16.mxu0 %v335_v10  ;;  %314 = vmatprep.subr.bf16.mxu1 %v335_v10 }
  0x17   :  { %292 = vmatpush3.bf16.msra.mxu0 %v336_v13  ;;  %322 = vmatpush3.bf16.msra.mxu1 %v336_v13 }
  0x18   :  { %293 = vmatprep.subr.bf16.mxu0 %v337_v14  ;;  %315 = vmatprep.subr.bf16.mxu1 %v337_v14 }
  0x1b   :  { %294 = vmatpush3.bf16.msra.mxu0 %v338_v15  ;;  %323 = vmatpush3.bf16.msra.mxu1 %v338_v15 }
  0x1c   :  { %295 = vmatprep.subr.bf16.mxu0 %v339_v16  ;;  %316 = vmatprep.subr.bf16.mxu1 %v339_v16 }
  0x1f   :  { %296 = vmatpush3.bf16.msra.mxu0 %v340_v17  ;;  %324 = vmatpush3.bf16.msra.mxu1 %v340_v17 }
  0x22   :  { %207 = vmatmul.mubr.bf16.vlgmr.msra.gmra.mrb[0].mxu0 %v341_v18  ;;  %215 = vmatmul.mubr.bf16.vlgmr.msra.gmra.mrb[0].mxu1 %v344_v19 }
  0xf5   :  { %v297_v20 = vpop.f32.mrb[0].mxu0  ;;  %v303_v21 = vpop.f32.mrb[0].mxu1 }
  0xf6   :  { %v298_v23 = vpop.f32.mrb[1].mxu0  ;;  %v304_v24 = vpop.f32.mrb[1].mxu1 }
  0xf7   :  { %v299_v25 = vadd.f32 %v298_v23, %v297_v20  ;;  %v305_v26 = vadd.f32 %v304_v24, %v303_v21  ;;  %v300_v27 = vpop.f32.mrb[2].mxu0  ;;  %v306_v28 = vpop.f32.mrb[2].mxu1 }
  0xf8   :  { %v301_v29 = vpop.f32.mrb[3].mxu0  ;;  %v307_v30 = vpop.f32.mrb[3].mxu1 }
  0xf9   :  { %v209_v31 = vadd.f32 %v299_v25, %v252_v22  ;;  %v217_v32 = vadd.f32 %v305_v26, %v252_v22  ;;  %v302_v33 = vadd.f32 %v301_v29, %v300_v27  ;;  %v308_v34 = vadd.f32 %v307_v30, %v306_v28 }
  0xfb   :  { %v223_v35 = vmax.f32 %v209_v31, 0.0  ;;  %v225_v36 = vmax.f32 %v217_v32, 0.0  ;;  %v212_v37 = vadd.f32 %v302_v33, %v252_v22  ;;  %v220_v38 = vadd.f32 %v308_v34, %v252_v22 }
  0xfd   :  { %v277_v39 = vpack.c.bf16 %v223_v35, %v223_v35  ;;  %v279_v40 = vpack.c.bf16 %v225_v36, %v225_v36  ;;  %v224_v41 = vmax.f32 %v212_v37, 0.0  ;;  %v226_v42 = vmax.f32 %v220_v38, 0.0 }
  0xff   :  { %244 = vst.msk [vmem:[%s445_s3] sm:$0xf] %vm243_vm0, %v277_v39  ;;  %246 = vst.msk [vmem:[%s445_s3 + $0x8] sm:$0xf] %vm243_vm0, %v279_v40  ;;  %v278_v43 = vpack.c.bf16 %v224_v41, %v224_v41  ;;  %v280_v44 = vpack.c.bf16 %v226_v42, %v226_v42 }
 0x101   :  { %245 = vst.msk [vmem:[%s445_s3 + $0x4] sm:$0xf] %vm243_vm0, %v278_v43  ;;  %247 = vst.msk [vmem:[%s445_s3 + $0xc] sm:$0xf] %vm243_vm0, %v280_v44 }

// kernel: vqvae_forward.13
= control target key start
LH: loop header
LB: loop body
LE: loop exit
PB: predicated region body
PF: predicated region fallthrough
CT: control target
= control target key end

     0   :  { %vm204_vm0 = vcmask 261120   ;;  %vm329_vm1 = vcmask 257024   ;;  %s550_s1 = inlined_call_operand.vmem [shape: bf16[288,32], index: 1, kind: input, shape index: {}]   ;;  %s551_s0 = inlined_call_operand.vmem [shape: bf16[32,288], index: 0, kind: input, shape index: {}]   ;;  %s552_s2 = inlined_call_operand.vmem [shape: f32[1,32], index: 2, kind: input, shape index: {}]   ;;  %s553_s3 = inlined_call_operand.vmem [shape: bf16[32,32], index: 3, kind: output, shape index: {}]  }
   0x1   :  { %v413_v0 = vld [vmem:[%s550_s1 + $0x40] sm:$0xff]   ;;  %v415_v2 = vld [vmem:[%s550_s1 + $0x48] sm:$0xff]   ;;  %v417_v4 = vld [vmem:[%s550_s1 + $0x50] sm:$0xff]  }
   0x2   :  { %v414_v1 = vld [vmem:[%s550_s1] sm:$0xff]   ;;  %373 = vmatprep.subr.bf16.mxu0 %v413_v0  ;;  %v416_v3 = vld [vmem:[%s550_s1 + $0x8] sm:$0xff]   ;;  %v418_v5 = vld [vmem:[%s550_s1 + $0x10] sm:$0xff]  }
   0x3   :  { %374 = vmatpush3.bf16.msra.mxu0 %v414_v1  ;;  %v419_v6 = vld [vmem:[%s550_s1 + $0x58] sm:$0xff]   ;;  %v421_v8 = vld [vmem:[%s550_s1 + $0x60] sm:$0xff]   ;;  %v423_v11 = vld [vmem:[%s550_s1 + $0x68] sm:$0xff]  }
   0x4   :  { %375 = vmatprep.subr.bf16.mxu0 %v415_v2  ;;  %v420_v7 = vld [vmem:[%s550_s1 + $0x18] sm:$0xff]   ;;  %v422_v9 = vld [vmem:[%s550_s1 + $0x20] sm:$0xff]   ;;  %v424_v12 = vld [vmem:[%s550_s1 + $0x28] sm:$0xff]  }
   0x5   :  { %v428_v10 = vld [vmem:[%s550_s1 + $0x80] sm:$0xff]   ;;  %v425_v13 = vld [vmem:[%s550_s1 + $0x70] sm:$0xff]   ;;  %v433_v15 = vld [vmem:[%s550_s1 + $0x88] sm:$0xff]  }
   0x6   :  { %405 = vmatprep.subr.bf16.mxu1 %v428_v10  ;;  %v432_v14 = vld [vmem:[%s551_s0 + $0x4] ss:$12 sps:$4 sm:$0xff]   ;;  %v434_v16 = vld [vmem:[%s551_s0 + $0x8] ss:$12 sps:$4 sm:$0xff]   ;;  %v435_v17 = vld [vmem:[%s551_s0 + $0x20] ss:$12 sps:$4 sm:$0xff]  }
   0x7   :  { %376 = vmatpush3.bf16.msra.mxu0 %v416_v3  ;;  %406 = vmatpush3.bf16.msra.mxu1 %v428_v10  ;;  %v426_v18 = vld [vmem:[%s550_s1 + $0x30] sm:$0xff]   ;;  %v427_v19 = vld [vmem:[%s550_s1 + $0x78] sm:$0xff]   ;;  %v430_v21 = vld [vmem:[%s551_s0] ss:$12 sps:$4 sm:$0xff]  }
   0x8   :  { %377 = vmatprep.subr.bf16.mxu0 %v417_v4  ;;  %243 = vmatprep.mubr.bf16.mxu0 %v432_v14  ;;  %v429_v20 = vld [vmem:[%s550_s1 + $0x38] sm:$0xff]   ;;  %v338_v30 = vld [vmem:[%s552_s2] ss:$0 sm:$0xff] }
   0x9   :  { %407 = vmatprep.subr.bf16.mxu1 %v433_v15  ;;  %409 = vmatprep.mubr.msk.bf16.mxu1 %vm204_vm0, %v434_v16  ;;  %v436_v22 = vld [vmem:[%s551_s0 + $0x1c] ss:$12 sps:$4 sm:$0xff]   ;;  %v438_v23 = vld [vmem:[%s551_s0 + $0x18] ss:$12 sps:$4 sm:$0xff]  }
   0xb   :  { %378 = vmatpush3.bf16.msra.mxu0 %v418_v5  ;;  %408 = vmatpush3.bf16.msra.mxu1 %v433_v15 }
   0xc   :  { %379 = vmatprep.subr.bf16.mxu0 %v419_v6 }
   0xe   :  { %410 = vmatmul.mubr.msk.bf16.vlgmr.msra.gmra.mrb[0].mxu1 %vm204_vm0, %v435_v17 }
   0xf   :  { %380 = vmatpush3.bf16.msra.mxu0 %v420_v7 }
  0x10   :  { %381 = vmatprep.subr.bf16.mxu0 %v421_v8 }
  0x13   :  { %382 = vmatpush3.bf16.msra.mxu0 %v422_v9 }
  0x14   :  { %383 = vmatprep.subr.bf16.mxu0 %v423_v11 }
  0x17   :  { %384 = vmatpush3.bf16.msra.mxu0 %v424_v12 }
  0x18   :  { %385 = vmatprep.subr.bf16.mxu0 %v425_v13 }
  0x1b   :  { %386 = vmatpush3.bf16.msra.mxu0 %v426_v18 }
  0x1c   :  { %387 = vmatprep.subr.bf16.mxu0 %v427_v19 }
  0x1f   :  { %388 = vmatpush3.bf16.msra.mxu0 %v429_v20 }
  0x22   :  { %244 = vmatmul.mubr.bf16.vlgmr.msra.gmra.mrb[0].mxu0 %v430_v21 }
  0x23   :  { %251 = vmatprep.mubr.bf16.mxu0 %v436_v22 }
  0x2a   :  { %252 = vmatmul.mubr.bf16.gmra.mrb[4].mxu0 %v438_v23 }
  0xe1   :  { %v411_v24 = vpop.f32.mrb[0].mxu1 }
  0xe2   :  { %v294_v25 = vpop.f32.mrb[1].mxu1 }
  0xe3   :  { %v412_v26 = vpop.f32.mrb[2].mxu1 }
  0xe4   :  { %v297_v27 = vpop.f32.mrb[3].mxu1 }
  0xf5   :  { %v389_v28 = vpop.f32.mrb[0].mxu0 }
  0xf6   :  { %v390_v29 = vpop.f32.mrb[1].mxu0 }
  0xf7   :  { %v391_v31 = vadd.f32 %v390_v29, %v389_v28  ;;  %v392_v32 = vpop.f32.mrb[2].mxu0 }
  0xf8   :  { %v393_v33 = vpop.f32.mrb[3].mxu0 }
  0xf9   :  { %v394_v34 = vadd.f32 %v393_v33, %v392_v32  ;;  %v246_v35 = vadd.f32 %v391_v31, %v338_v30 }
  0xfb   :  { %v295_v36 = vadd.f32 %v294_v25, %v246_v35  ;;  %v249_v37 = vadd.f32 %v394_v34, %v338_v30 }
  0xfd   :  { %v309_v38 = vmax.f32 %v295_v36, 0.0  ;;  %v298_v39 = vadd.f32 %v297_v27, %v249_v37  ;;  %v395_v40 = vpop.f32.mrb[4].mxu0 }
  0xfe   :  { %v396_v41 = vpop.f32.mrb[5].mxu0 }
  0xff   :  { %v369_v42 = vpack.c.bf16 %v309_v38, %v309_v38  ;;  %v310_v43 = vmax.f32 %v298_v39, 0.0  ;;  %v397_v44 = vadd.f32 %v396_v41, %v395_v40  ;;  %v398_v45 = vpop.f32.mrb[6].mxu0 }
 0x100   :  { %v399_v46 = vpop.f32.mrb[7].mxu0 }
 0x101   :  { %330 = vst.msk [vmem:[%s553_s3] sm:$0xf] %vm329_vm1, %v369_v42  ;;  %v370_v47 = vpack.c.bf16 %v310_v43, %v310_v43  ;;  %v254_v48 = vadd.f32 %v397_v44, %v338_v30  ;;  %v400_v49 = vadd.f32 %v399_v46, %v398_v45 }
 0x103   :  { %331 = vst.msk [vmem:[%s553_s3 + $0x4] sm:$0xf] %vm329_vm1, %v370_v47  ;;  %v303_v50 = vadd.f32 %v411_v24, %v254_v48  ;;  %v257_v51 = vadd.f32 %v400_v49, %v338_v30 }
 0x105   :  { %v311_v52 = vmax.f32 %v303_v50, 0.0  ;;  %v306_v53 = vadd.f32 %v412_v26, %v257_v51 }
 0x107   :  { %v371_v54 = vpack.c.bf16 %v311_v52, %v311_v52  ;;  %v312_v55 = vmax.f32 %v306_v53, 0.0 }
 0x109   :  { %332 = vst.msk [vmem:[%s553_s3 + $0x8] sm:$0xf] %vm329_vm1, %v371_v54  ;;  %v372_v56 = vpack.c.bf16 %v312_v55, %v312_v55 }
 0x10b   :  { %333 = vst.msk [vmem:[%s553_s3 + $0xc] sm:$0xf] %vm329_vm1, %v372_v56 }

// kernel: vqvae_forward.16
= control target key start
LH: loop header
LB: loop body
LE: loop exit
PB: predicated region body
PF: predicated region fallthrough
CT: control target
= control target key end

     0   :  { %vm63_vm0 = vcmask 261120   ;;  %vm121_vm1 = vcmask 130048   ;;  %v242_v29 = vlaneseq  ;;  %vm457_vm14 = vcmask 125952   ;;  %s805_s1 = inlined_call_operand.vmem [shape: bf16[32,16], index: 1, kind: input, shape index: {}]   ;;  %s806_s0 = inlined_call_operand.vmem [shape: bf16[32,32], index: 0, kind: input, shape index: {}]   ;;  %s807_s4 = inlined_call_operand.vmem [shape: f32[16,128], index: 4, kind: input, shape index: {}]   ;;  %s808_s2 = inlined_call_operand.vmem [shape: f32[1,16], index: 2, kind: input, shape index: {}]   ;;  %s809_s5 = inlined_call_operand.vmem [shape: f32[1,128], index: 5, kind: input, shape index: {}]   ;;  %s810_s3 = inlined_call_operand.vmem [shape: f32[128,16], index: 3, kind: input, shape index: {}]   ;;  %s811_s6 = inlined_call_operand.vmem [shape: bf16[32,16], index: 6, kind: output, shape index: {0}]   ;;  %s812_s7 = inlined_call_operand.vmem [shape: f32[32,1], index: 7, kind: output, shape index: {1}]  }
   0x1   :  { %v626_v0 = vld [vmem:[%s805_s1] sm:$0xff]   ;;  %v627_v1 = vld [vmem:[%s805_s1 + $0x8] sm:$0xff]   ;;  %v322_v49 = vld [vmem:[%s810_s3 + $0x10] sm:$0xff]  ;;  %vm462_vm15 = vcmask 7168  }
   0x2   :  { %533 = vmatprep.subr.bf16.mxu0 %v626_v0  ;;  %v628_v2 = vld [vmem:[%s806_s0] sm:$0xff]   ;;  %v120_v4 = vld [vmem:[%s807_s4 + $0x8] sm:$0xff]  ;;  %v711_v30 = vand.u32 127, %v242_v29  ;;  %v323_v51 = vld [vmem:[%s810_s3 + $0x18] sm:$0xff] }
   0x3   :  { %534 = vmatpush3.bf16.msra.mxu0 %v626_v0  ;;  %537 = vmatprep.mubr.msk.bf16.mxu0 %vm63_vm0, %v628_v2  ;;  %v119_v3 = vld [vmem:[%s807_s4] sm:$0xff]  ;;  %v629_v6 = vld [vmem:[%s806_s0 + $0x8] sm:$0xff]   ;;  %v597_v52 = vpack.c.bf16 %v323_v51, %v322_v49  ;;  %v326_v56 = vld [vmem:[%s810_s3 + $0x30] sm:$0xff] }
   0x4   :  { %535 = vmatprep.subr.bf16.mxu0 %v627_v1  ;;  %v589_v5 = vpack.c.bf16 %v120_v4, %v119_v3  ;;  %v475_v7 = vld [vmem:[%s808_s2] ss:$0 sm:$0xff]  ;;  %v321_v48 = vld [vmem:[%s810_s3 + $0x8] sm:$0xff]  ;;  %v327_v57 = vld [vmem:[%s810_s3 + $0x38] sm:$0xff] }
   0x5   :  { %v486_v18 = vld [vmem:[%s809_s5] ss:$0 sm:$0xff]  ;;  %v325_v54 = vld [vmem:[%s810_s3 + $0x28] sm:$0xff]  ;;  %v605_v58 = vpack.c.bf16 %v327_v57, %v326_v56  ;;  %v330_v62 = vld [vmem:[%s810_s3 + $0x50] sm:$0xff] }
   0x6   :  { %v320_v47 = vld [vmem:[%s810_s3] sm:$0xff]  ;;  %v329_v60 = vld [vmem:[%s810_s3 + $0x48] sm:$0xff]  ;;  %v331_v63 = vld [vmem:[%s810_s3 + $0x58] sm:$0xff] }
   0x7   :  { %536 = vmatpush3.bf16.msra.mxu0 %v627_v1  ;;  %v593_v50 = vpack.c.bf16 %v321_v48, %v320_v47  ;;  %v324_v53 = vld [vmem:[%s810_s3 + $0x20] sm:$0xff]  ;;  %v613_v0 = vpack.c.bf16 %v331_v63, %v330_v62 }
   0x8   :  { %590 = vmatprep.subr.bf16.mxu0 %v589_v5  ;;  %v601_v55 = vpack.c.bf16 %v325_v54, %v324_v53  ;;  %v328_v59 = vld [vmem:[%s810_s3 + $0x40] sm:$0xff] }
   0x9   :  { %594 = vmatprep.subr.bf16.mxu1 %v593_v50  ;;  %v609_v61 = vpack.c.bf16 %v329_v60, %v328_v59 }
   0xa   :  { %538 = vmatmul.mubr.msk.bf16.vlgmr.msra.gmra.mrb[0].mxu0 %vm63_vm0, %v629_v6  ;;  %596 = vmatpush3.bf16.msra.mxu1 %v593_v50 }
   0xb   :  { %592 = vmatpush3.bf16.msra.mxu0 %v589_v5  ;;  %598 = vmatprep.subr.bf16.mxu1 %v597_v52 }
   0xe   :  { %600 = vmatpush3.bf16.msra.mxu1 %v597_v52 }
   0xf   :  { %602 = vmatprep.subr.bf16.mxu1 %v601_v55 }
  0x12   :  { %604 = vmatpush3.bf16.msra.mxu1 %v601_v55 }
  0x13   :  { %606 = vmatprep.subr.bf16.mxu1 %v605_v58 }
  0x16   :  { %608 = vmatpush3.bf16.msra.mxu1 %v605_v58 }
  0x17   :  { %610 = vmatprep.subr.bf16.mxu1 %v609_v61 }
  0x1a   :  { %612 = vmatpush3.bf16.msra.mxu1 %v609_v61 }
  0x1b   :  { %614 = vmatprep.subr.bf16.mxu1 %v613_v0 }
  0x1e   :  { %616 = vmatpush3.bf16.msra.mxu1 %v613_v0 }
  0xdd   :  { %v539_v8 = vpop.f32.mrb[0].mxu0 }
  0xde   :  { %v104_v9 = vpop.f32.mrb[1].mxu0  ;;  %v698_v14 = vadd.f32 %v539_v8, %v475_v7 }
  0xdf   :  { %v692_v10 = vadd.f32 %v475_v7, %v104_v9  ;;  %v540_v11 = vpop.f32.mrb[2].mxu0 }
  0xe0   :  { %v107_v12 = vpop.f32.mrb[3].mxu0  ;;  %v704_v15 = vadd.f32 %v540_v11, %v475_v7 }
  0xe1   :  { %v694_v13 = vadd.f32 %v475_v7, %v107_v12  ;;  %545 = vmatprep.mubr.msk.f32.mxu0 %vm121_vm1, %v692_v10 }
  0xe3   :  { %546 = vmatmul.mubr.msk.f32.vlgmr.msra.gmra.mrb[4].mxu0 %vm121_vm1, %v694_v13 }
  0xe4   :  { %548 = vmatprep.mubr.msk.f32.mxu0 %vm121_vm1, %v698_v14 }
  0xe7   :  { %549 = vmatmul.mubr.msk.f32.gmra.mrb[6].mxu0 %vm121_vm1, %v704_v15 }
 0x1b6   :  { %v547_v16 = vpop.f32.mrb[4].mxu0 }
 0x1b7   :  { %v200_v17 = vpop.f32.mrb[5].mxu0  ;;  %v221_v20 = vmul.f32 2.0, %v547_v16 }
 0x1b8   :  { %v220_v19 = vmul.f32 2.0, %v200_v17 }
 0x1b9   :  { %v231_v26 = vsub.f32 %v486_v18, %v221_v20 }
 0x1ba   :  { %v550_v21 = vpop.f32.mrb[6].mxu0  ;;  %v230_v22 = vsub.f32 %v486_v18, %v220_v19 }
 0x1bb   :  { %v210_v23 = vpop.f32.mrb[7].mxu0  ;;  %v223_v25 = vmul.f32 2.0, %v550_v21  ;;  %v332_v21 = vld [vmem:[%s810_s3 + $0x60] sm:$0xff] }
 0x1bc   :  { %v222_v24 = vmul.f32 2.0, %v210_v23  ;;  %234 = vmin.xlane.f32.xlu0 %v230_v22 }
 0x1bd   :  { %v233_v28 = vsub.f32 %v486_v18, %v223_v25  ;;  %v335_v25 = vld [vmem:[%s810_s3 + $0x78] sm:$0xff] }
 0x1be   :  { %v232_v27 = vsub.f32 %v486_v18, %v222_v24  ;;  %v334_v24 = vld [vmem:[%s810_s3 + $0x70] sm:$0xff] }
 0x1c0   :  { %236 = vmin.xlane.f32.xlu0 %v231_v26  ;;  %238 = vmin.xlane.f32.xlu1 %v232_v27 }
 0x1c4   :  { %240 = vmin.xlane.f32.xlu1 %v233_v28 }
 0x249   :  { %v235_v31 = vpop.xlane.xlu0 %234 }
 0x24a   :  { %vm244_vm2 = vcmp.le.f32.partialorder %v230_v22, %v235_v31  ;;  %v333_v22 = vld [vmem:[%s810_s3 + $0x68] sm:$0xff] }
 0x24b   :  { %v248_v32 = vsel %vm244_vm2, %v711_v30, 1073741824  ;;  %v617_v23 = vpack.c.bf16 %v333_v22, %v332_v21 }
 0x24c   :  { %v253_v33 = vshra.s32 %v248_v32, 16  ;;  %v252_v1 = vand.u32 65535, %v248_v32 }
 0x24d   :  { %v237_v34 = vpop.xlane.xlu0 %236  ;;  %v239_v35 = vpop.xlane.xlu1 %238  ;;  %618 = vmatprep.subr.bf16.mxu1 %v617_v23 }
 0x24e   :  { %vm245_vm3 = vcmp.le.f32.partialorder %v231_v26, %v237_v34  ;;  %vm246_vm4 = vcmp.le.f32.partialorder %v232_v27, %v239_v35  ;;  %v255_v36 = vcvt.s32.f32 %v253_v33  ;;  %v254_v5 = vcvt.s32.f32 %v252_v1  ;;  %620 = vmatpush3.bf16.msra.mxu1 %v617_v23 }
 0x24f   :  { %v249_v37 = vsel %vm245_vm3, %v711_v30, 1073741824  ;;  %v250_v38 = vsel %vm246_vm4, %v711_v30, 1073741824  ;;  %v621_v26 = vpack.c.bf16 %v335_v25, %v334_v24 }
 0x250   :  { %256 = vmin.xlane.f32.xlu0 %v255_v36  ;;  %v267_v39 = vshra.s32 %v249_v37, 16  ;;  %v281_v40 = vshra.s32 %v250_v38, 16  ;;  %v266_v2 = vand.u32 65535, %v249_v37  ;;  %v280_v3 = vand.u32 65535, %v250_v38 }
 0x251   :  { %v241_v41 = vpop.xlane.xlu1 %240  ;;  %622 = vmatprep.subr.bf16.mxu1 %v621_v26 }
 0x252   :  { %vm247_vm5 = vcmp.le.f32.partialorder %v233_v28, %v241_v41  ;;  %v269_v42 = vcvt.s32.f32 %v267_v39  ;;  %v283_v43 = vcvt.s32.f32 %v281_v40  ;;  %v282_v11 = vcvt.s32.f32 %v280_v3  ;;  %624 = vmatpush3.bf16.msra.mxu1 %v621_v26 }
 0x253   :  { %v251_v44 = vsel %vm247_vm5, %v711_v30, 1073741824  ;;  %v268_v12 = vcvt.s32.f32 %v266_v2 }
 0x254   :  { %270 = vmin.xlane.f32.xlu1 %v269_v42  ;;  %284 = vmin.xlane.f32.xlu0 %v283_v43  ;;  %v295_v45 = vshra.s32 %v251_v44, 16  ;;  %v294_v7 = vand.u32 65535, %v251_v44 }
 0x256   :  { %v297_v46 = vcvt.s32.f32 %v295_v45  ;;  %v296_v19 = vcvt.s32.f32 %v294_v7 }
 0x258   :  { %298 = vmin.xlane.f32.xlu1 %v297_v46 }
 0x2dd   :  { %v257_v4 = vpop.xlane.xlu0 %256 }
 0x2de   :  { %vm258_vm6 = vcmp.eq.f32.partialorder %v255_v36, %v257_v4  ;;  %v263_v27 = vcvt.f32.s32 %v257_v4 }
 0x2df   :  { %v259_v6 = vsel %vm258_vm6, %v254_v5, inf }
 0x2e0   :  { %260 = vmin.xlane.f32.xlu0 %v259_v6  ;;  %v264_v32 = vshll.u32 %v263_v27, 16 }
 0x2e1   :  { %v285_v8 = vpop.xlane.xlu0 %284  ;;  %v271_v9 = vpop.xlane.xlu1 %270 }
 0x2e2   :  { %vm286_vm7 = vcmp.eq.f32.partialorder %v283_v43, %v285_v8  ;;  %vm272_vm8 = vcmp.eq.f32.partialorder %v269_v42, %v271_v9  ;;  %v291_v28 = vcvt.f32.s32 %v285_v8  ;;  %v277_v29 = vcvt.f32.s32 %v271_v9 }
 0x2e3   :  { %v287_v16 = vsel %vm286_vm7, %v282_v11, inf  ;;  %v273_v17 = vsel %vm272_vm8, %v268_v12, inf  ;;  %v630_v42 = vmov 1.0  }
 0x2e4   :  { %288 = vmin.xlane.f32.xlu0 %v287_v16  ;;  %274 = vmin.xlane.f32.xlu1 %v273_v17  ;;  %v292_v35 = vshll.u32 %v291_v28, 16  ;;  %v278_v36 = vshll.u32 %v277_v29, 16 }
 0x2e5   :  { %v299_v18 = vpop.xlane.xlu1 %298 }
 0x2e6   :  { %vm300_vm9 = vcmp.eq.f32.partialorder %v297_v46, %v299_v18  ;;  %v305_v39 = vcvt.f32.s32 %v299_v18 }
 0x2e7   :  { %v301_v20 = vsel %vm300_vm9, %v296_v19, inf }
 0x2e8   :  { %302 = vmin.xlane.f32.xlu1 %v301_v20  ;;  %v306_v46 = vshll.u32 %v305_v39, 16 }
 0x36d   :  { %v261_v31 = vpop.xlane.xlu0 %260 }
 0x36e   :  { %v262_v33 = vcvt.f32.s32 %v261_v31 }
 0x370   :  { %v265_v34 = vadd.s32 %v264_v32, %v262_v33 }
 0x371   :  { %v289_v37 = vpop.xlane.xlu0 %288  ;;  %v275_v38 = vpop.xlane.xlu1 %274 }
 0x372   :  { %v290_v40 = vcvt.f32.s32 %v289_v37  ;;  %v276_v41 = vcvt.f32.s32 %v275_v38  ;;  %vm308_vm10 = vcmp.eq.s32.totalorder %v711_v30, %v265_v34 }
 0x373   :  { %583 = vmatprep.mubr.msk.f32.mxu1 %vm308_vm10, %v630_v42 }
 0x374   :  { %v293_v43 = vadd.s32 %v292_v35, %v290_v40  ;;  %v279_v44 = vadd.s32 %v278_v36, %v276_v41 }
 0x375   :  { %v303_v45 = vpop.xlane.xlu1 %302 }
 0x376   :  { %v304_v47 = vcvt.f32.s32 %v303_v45  ;;  %vm309_vm11 = vcmp.eq.s32.totalorder %v711_v30, %v279_v44  ;;  %vm310_vm12 = vcmp.eq.s32.totalorder %v711_v30, %v293_v43 }
 0x377   :  { %584 = vmatmul.mubr.msk.f32.vlgmr.msra.gmra.mrb[0].mxu1 %vm309_vm11, %v630_v42 }
 0x378   :  { %v307_v48 = vadd.s32 %v306_v46, %v304_v47  ;;  %586 = vmatprep.mubr.msk.f32.mxu1 %vm310_vm12, %v630_v42 }
 0x37a   :  { %vm311_vm13 = vcmp.eq.s32.totalorder %v711_v30, %v307_v48 }
 0x37b   :  { %587 = vmatmul.mubr.msk.f32.gmra.mrb[2].mxu1 %vm311_vm13, %v630_v42 }
 0x44a   :  { %v585_v49 = vpop.f32.mrb[0].mxu1 }
 0x44b   :  { %v422_v50 = vsub.f32 %v585_v49, %v694_v13  ;;  %v500_v51 = vpack.c.bf16 %v585_v49, %v585_v49  ;;  %v402_v52 = vpop.f32.mrb[1].mxu1 }
 0x44c   :  { %v421_v53 = vsub.f32 %v402_v52, %v692_v10  ;;  %v499_v54 = vpack.c.bf16 %v402_v52, %v402_v52 }
 0x44d   :  { %v426_v55 = vmul.f32 %v422_v50, %v422_v50  ;;  %459 = vst.msk [vmem:[%s811_s6 + $0x4] sm:$0xf] %vm457_vm14, %v500_v51 }
 0x44e   :  { %v425_v56 = vmul.f32 %v421_v53, %v421_v53  ;;  %458 = vst.msk [vmem:[%s811_s6] sm:$0xf] %vm457_vm14, %v499_v54  ;;  %v588_v30 = vpop.f32.mrb[2].mxu1 }
 0x44f   :  { %v424_v13 = vsub.f32 %v588_v30, %v704_v15  ;;  %v502_v57 = vpack.c.bf16 %v588_v30, %v588_v30  ;;  %v412_v58 = vpop.f32.mrb[3].mxu1  ;;  %v432_v10 = vsel %vm121_vm1, %v426_v55, 0.0 }
 0x450   :  { %v423_v59 = vsub.f32 %v412_v58, %v698_v14  ;;  %v501_v60 = vpack.c.bf16 %v412_v58, %v412_v58  ;;  %433 = vadd.xlane.f32.xlu1 %v432_v10  ;;  %v429_v61 = vsel %vm121_vm1, %v425_v56, 0.0 }
 0x451   :  { %v428_v62 = vmul.f32 %v424_v13, %v424_v13  ;;  %461 = vst.msk [vmem:[%s811_s6 + $0xc] sm:$0xf] %vm457_vm14, %v502_v57  ;;  %430 = vadd.xlane.f32.xlu0 %v429_v61 }
 0x452   :  { %v427_v63 = vmul.f32 %v423_v59, %v423_v59  ;;  %460 = vst.msk [vmem:[%s811_s6 + $0x8] sm:$0xf] %vm457_vm14, %v501_v60 }
 0x453   :  { %v438_v15 = vsel %vm121_vm1, %v428_v62, 0.0 }
 0x454   :  { %439 = vadd.xlane.f32.xlu1 %v438_v15  ;;  %v435_v14 = vsel %vm121_vm1, %v427_v63, 0.0 }
 0x455   :  { %436 = vadd.xlane.f32.xlu0 %v435_v14 }
 0x4dd   :  { %v434_v0 = vpop.xlane.xlu1 %433 }
 0x4de   :  { %464 = vst.msk [vmem:[%s812_s7 + $0x8] sm:$0xff] %vm462_vm15, %v434_v0  ;;  %v431_v1 = vpop.xlane.xlu0 %430 }
 0x4df   :  { %463 = vst.msk [vmem:[%s812_s7] sm:$0xff] %vm462_vm15, %v431_v1 }
 0x4e1   :  { %v440_v2 = vpop.xlane.xlu1 %439 }
 0x4e2   :  { %466 = vst.msk [vmem:[%s812_s7 + $0x18] sm:$0xff] %vm462_vm15, %v440_v2  ;;  %v437_v3 = vpop.xlane.xlu0 %436 }
 0x4e3   :  { %465 = vst.msk [vmem:[%s812_s7 + $0x10] sm:$0xff] %vm462_vm15, %v437_v3 }

// kernel: vqvae_forward.14
= control target key start
LH: loop header
LB: loop body
LE: loop exit
PB: predicated region body
PF: predicated region fallthrough
CT: control target
= control target key end

     0   :  { %vm213_vm0 = vcmask 261120   ;;  %vm339_vm1 = vcmask 130048   ;;  %vm427_vm2 = vcmask 257024   ;;  %s694_s1 = inlined_call_operand.vmem [shape: bf16[288,16], index: 1, kind: input, shape index: {}]   ;;  %s695_s0 = inlined_call_operand.vmem [shape: bf16[32,288], index: 0, kind: input, shape index: {}]   ;;  %s696_s3 = inlined_call_operand.vmem [shape: bf16[16,32], index: 3, kind: input, shape index: {}]   ;;  %s697_s2 = inlined_call_operand.vmem [shape: f32[1,16], index: 2, kind: input, shape index: {}]   ;;  %s698_s5 = inlined_call_operand.vmem [shape: bf16[32,32], index: 5, kind: input, shape index: {}]   ;;  %s699_s4 = inlined_call_operand.vmem [shape: f32[1,32], index: 4, kind: input, shape index: {}]   ;;  %s700_s6 = inlined_call_operand.vmem [shape: bf16[32,32], index: 6, kind: output, shape index: {}]  }
   0x1   :  { %v533_v0 = vld [vmem:[%s694_s1 + $0x40] sm:$0xff]   ;;  %v535_v2 = vld [vmem:[%s694_s1 + $0x48] sm:$0xff]   ;;  %v537_v4 = vld [vmem:[%s694_s1 + $0x50] sm:$0xff]  }
   0x2   :  { %v534_v1 = vld [vmem:[%s694_s1] sm:$0xff]   ;;  %484 = vmatprep.subr.bf16.mxu0 %v533_v0  ;;  %v536_v3 = vld [vmem:[%s694_s1 + $0x8] sm:$0xff]   ;;  %v538_v5 = vld [vmem:[%s694_s1 + $0x10] sm:$0xff]  }
   0x3   :  { %485 = vmatpush3.bf16.msra.mxu0 %v534_v1  ;;  %v539_v6 = vld [vmem:[%s694_s1 + $0x58] sm:$0xff]   ;;  %v541_v8 = vld [vmem:[%s694_s1 + $0x60] sm:$0xff]   ;;  %v543_v11 = vld [vmem:[%s694_s1 + $0x68] sm:$0xff]  }
   0x4   :  { %486 = vmatprep.subr.bf16.mxu0 %v535_v2  ;;  %v540_v7 = vld [vmem:[%s694_s1 + $0x18] sm:$0xff]   ;;  %v542_v9 = vld [vmem:[%s694_s1 + $0x20] sm:$0xff]   ;;  %v544_v12 = vld [vmem:[%s694_s1 + $0x28] sm:$0xff]  }
   0x5   :  { %v548_v10 = vld [vmem:[%s694_s1 + $0x80] sm:$0xff]   ;;  %v545_v13 = vld [vmem:[%s694_s1 + $0x70] sm:$0xff]   ;;  %v553_v15 = vld [vmem:[%s694_s1 + $0x88] sm:$0xff]  }
   0x6   :  { %519 = vmatprep.subr.bf16.mxu1 %v548_v10  ;;  %v552_v14 = vld [vmem:[%s695_s0 + $0x4] ss:$12 sps:$4 sm:$0xff]   ;;  %v554_v16 = vld [vmem:[%s695_s0 + $0x8] ss:$12 sps:$4 sm:$0xff]   ;;  %v555_v17 = vld [vmem:[%s695_s0 + $0x20] ss:$12 sps:$4 sm:$0xff]  }
   0x7   :  { %487 = vmatpush3.bf16.msra.mxu0 %v536_v3  ;;  %520 = vmatpush3.bf16.msra.mxu1 %v548_v10  ;;  %v546_v18 = vld [vmem:[%s694_s1 + $0x30] sm:$0xff]   ;;  %v547_v19 = vld [vmem:[%s694_s1 + $0x78] sm:$0xff]   ;;  %v550_v21 = vld [vmem:[%s695_s0] ss:$12 sps:$4 sm:$0xff]  }
   0x8   :  { %488 = vmatprep.subr.bf16.mxu0 %v537_v4  ;;  %252 = vmatprep.mubr.bf16.mxu0 %v552_v14  ;;  %v549_v20 = vld [vmem:[%s694_s1 + $0x38] sm:$0xff]   ;;  %v559_v24 = vld [vmem:[%s696_s3] sm:$0xff]   ;;  %v483_v56 = vld [vmem:[%s698_s5 + $0x8] sm:$0xff]  }
   0x9   :  { %521 = vmatprep.subr.bf16.mxu1 %v553_v15  ;;  %523 = vmatprep.mubr.msk.bf16.mxu1 %vm213_vm0, %v554_v16  ;;  %v556_v22 = vld [vmem:[%s695_s0 + $0x1c] ss:$12 sps:$4 sm:$0xff]   ;;  %v558_v23 = vld [vmem:[%s695_s0 + $0x18] ss:$12 sps:$4 sm:$0xff]   ;;  %v436_v31 = vld [vmem:[%s697_s2] ss:$0 sm:$0xff]  ;;  %v481_v59 = vunpack.c.l.bf16 %v483_v56  ;;  %v482_v0 = vunpack.c.h.bf16 %v483_v56 }
   0xa   :  { %v476_v57 = vld [vmem:[%s698_s5] sm:$0xff]  }
   0xb   :  { %489 = vmatpush3.bf16.msra.mxu0 %v538_v5  ;;  %522 = vmatpush3.bf16.msra.mxu1 %v553_v15  ;;  %v463_v58 = vld [vmem:[%s699_s4] ss:$0 sm:$0xff]  ;;  %v477_v61 = vunpack.c.l.bf16 %v476_v57  ;;  %v478_v3 = vunpack.c.h.bf16 %v476_v57 }
   0xc   :  { %490 = vmatprep.subr.bf16.mxu0 %v539_v6  ;;  %527 = vmatprep.subr.bf16.mxu1 %v559_v24 }
   0xe   :  { %524 = vmatmul.mubr.msk.bf16.vlgmr.msra.gmra.mrb[0].mxu1 %vm213_vm0, %v555_v17 }
   0xf   :  { %491 = vmatpush3.bf16.msra.mxu0 %v540_v7  ;;  %528 = vmatpush3.bf16.msra.mxu1 %v559_v24 }
  0x10   :  { %492 = vmatprep.subr.bf16.mxu0 %v541_v8 }
  0x13   :  { %493 = vmatpush3.bf16.msra.mxu0 %v542_v9 }
  0x14   :  { %494 = vmatprep.subr.bf16.mxu0 %v543_v11 }
  0x17   :  { %495 = vmatpush3.bf16.msra.mxu0 %v544_v12 }
  0x18   :  { %496 = vmatprep.subr.bf16.mxu0 %v545_v13 }
  0x1b   :  { %497 = vmatpush3.bf16.msra.mxu0 %v546_v18 }
  0x1c   :  { %498 = vmatprep.subr.bf16.mxu0 %v547_v19 }
  0x1f   :  { %499 = vmatpush3.bf16.msra.mxu0 %v549_v20 }
  0x22   :  { %253 = vmatmul.mubr.bf16.vlgmr.msra.gmra.mrb[0].mxu0 %v550_v21 }
  0x23   :  { %260 = vmatprep.mubr.bf16.mxu0 %v556_v22 }
  0x2a   :  { %261 = vmatmul.mubr.bf16.gmra.mrb[4].mxu0 %v558_v23 }
  0xe1   :  { %v525_v25 = vpop.f32.mrb[0].mxu1 }
  0xe2   :  { %v303_v26 = vpop.f32.mrb[1].mxu1 }
  0xe3   :  { %v526_v27 = vpop.f32.mrb[2].mxu1 }
  0xe4   :  { %v306_v28 = vpop.f32.mrb[3].mxu1 }
  0xf5   :  { %v500_v29 = vpop.f32.mrb[0].mxu0 }
  0xf6   :  { %v501_v30 = vpop.f32.mrb[1].mxu0 }
  0xf7   :  { %v502_v32 = vadd.f32 %v501_v30, %v500_v29  ;;  %v503_v33 = vpop.f32.mrb[2].mxu0 }
  0xf8   :  { %v504_v34 = vpop.f32.mrb[3].mxu0 }
  0xf9   :  { %v505_v35 = vadd.f32 %v504_v34, %v503_v33  ;;  %v255_v36 = vadd.f32 %v502_v32, %v436_v31 }
  0xfb   :  { %v304_v37 = vadd.f32 %v303_v26, %v255_v36  ;;  %v258_v38 = vadd.f32 %v505_v35, %v436_v31 }
  0xfd   :  { %v307_v39 = vadd.f32 %v306_v28, %v258_v38  ;;  %v506_v40 = vpop.f32.mrb[4].mxu0  ;;  %v318_v42 = vmax.f32 %v304_v37, 0.0 }
  0xfe   :  { %v507_v41 = vpop.f32.mrb[5].mxu0 }
  0xff   :  { %v319_v43 = vmax.f32 %v307_v39, 0.0  ;;  %v508_v44 = vadd.f32 %v507_v41, %v506_v40  ;;  %v509_v45 = vpop.f32.mrb[6].mxu0 }
 0x100   :  { %v510_v46 = vpop.f32.mrb[7].mxu0 }
 0x101   :  { %v322_v47 = vpack.c.bf16 %v319_v43, %v318_v42  ;;  %v263_v48 = vadd.f32 %v508_v44, %v436_v31  ;;  %v511_v49 = vadd.f32 %v510_v46, %v509_v45 }
 0x103   :  { %v312_v50 = vadd.f32 %v525_v25, %v263_v48  ;;  %v266_v51 = vadd.f32 %v511_v49, %v436_v31  ;;  %529 = vmatprep.mubr.msk.bf16.mxu1 %vm339_vm1, %v322_v47 }
 0x105   :  { %v315_v52 = vadd.f32 %v526_v27, %v266_v51  ;;  %v320_v53 = vmax.f32 %v312_v50, 0.0 }
 0x107   :  { %v321_v54 = vmax.f32 %v315_v52, 0.0 }
 0x109   :  { %v323_v55 = vpack.c.bf16 %v321_v54, %v320_v53 }
 0x10b   :  { %530 = vmatmul.mubr.msk.bf16.vlgmr.msra.gmra.mrb[4].mxu1 %vm339_vm1, %v323_v55 }
 0x1de   :  { %v531_v60 = vpop.f32.mrb[4].mxu1 }
 0x1df   :  { %v389_v62 = vadd.f32 %v531_v60, %v463_v58  ;;  %v380_v63 = vpop.f32.mrb[5].mxu1 }
 0x1e0   :  { %v381_v1 = vadd.f32 %v463_v58, %v380_v63  ;;  %v532_v2 = vpop.f32.mrb[6].mxu1 }
 0x1e1   :  { %v405_v4 = vadd.f32 %v481_v59, %v389_v62  ;;  %v392_v5 = vadd.f32 %v532_v2, %v463_v58  ;;  %v383_v6 = vpop.f32.mrb[7].mxu1 }
 0x1e2   :  { %v403_v7 = vadd.f32 %v477_v61, %v381_v1  ;;  %v384_v8 = vadd.f32 %v463_v58, %v383_v6 }
 0x1e3   :  { %v409_v9 = vmax.f32 %v405_v4, 0.0  ;;  %v406_v10 = vadd.f32 %v482_v0, %v392_v5 }
 0x1e4   :  { %v407_v11 = vmax.f32 %v403_v7, 0.0  ;;  %v404_v12 = vadd.f32 %v478_v3, %v384_v8 }
 0x1e5   :  { %v473_v13 = vpack.c.bf16 %v409_v9, %v409_v9  ;;  %v410_v14 = vmax.f32 %v406_v10, 0.0 }
 0x1e6   :  { %v471_v15 = vpack.c.bf16 %v407_v11, %v407_v11  ;;  %v408_v16 = vmax.f32 %v404_v12, 0.0 }
 0x1e7   :  { %430 = vst.msk [vmem:[%s700_s6 + $0x8] sm:$0xf] %vm427_vm2, %v473_v13  ;;  %v474_v17 = vpack.c.bf16 %v410_v14, %v410_v14 }
 0x1e8   :  { %428 = vst.msk [vmem:[%s700_s6] sm:$0xf] %vm427_vm2, %v471_v15  ;;  %v472_v18 = vpack.c.bf16 %v408_v16, %v408_v16 }
 0x1e9   :  { %431 = vst.msk [vmem:[%s700_s6 + $0xc] sm:$0xf] %vm427_vm2, %v474_v17 }
 0x1ea   :  { %429 = vst.msk [vmem:[%s700_s6 + $0x4] sm:$0xf] %vm427_vm2, %v472_v18 }

// kernel: vqvae_forward.17
= control target key start
LH: loop header
LB: loop body
LE: loop exit
PB: predicated region body
PF: predicated region fallthrough
CT: control target
= control target key end

     0   :  { %v259_v0 = vmov 0   ;;  %vm116_vm0 = vcmask 130048   ;;  %vm192_vm1 = vcmask 257024   ;;  %s334_s1 = inlined_call_operand.vmem [shape: bf16[144,32], index: 1, kind: input, shape index: {}]   ;;  %s335_s0 = inlined_call_operand.vmem [shape: bf16[32,144], index: 0, kind: input, shape index: {}]   ;;  %s336_s2 = inlined_call_operand.vmem [shape: f32[1,32], index: 2, kind: input, shape index: {}]   ;;  %s337_s3 = inlined_call_operand.vmem [shape: bf16[32,32], index: 3, kind: output, shape index: {}]  }
   0x1   :  { %123 = vmatprep.subr.bf16.mxu0 %v259_v0  ;;  %225 = vmatprep.subr.bf16.mxu1 %v259_v0  ;;  %v244_v1 = vld [vmem:[%s334_s1] sm:$0xff]   ;;  %v245_v2 = vld [vmem:[%s334_s1 + $0x8] sm:$0xff]   ;;  %v246_v3 = vld [vmem:[%s334_s1 + $0x10] sm:$0xff]  }
   0x2   :  { %124 = vmatpush1.bf16.msra.mxu0 %v244_v1  ;;  %234 = vmatpush1.bf16.msra.mxu1 %v244_v1  ;;  %v247_v4 = vld [vmem:[%s334_s1 + $0x18] sm:$0xff]   ;;  %v255_v5 = vld [vmem:[%s335_s0 + $0x4] ss:$8 sps:$4 sm:$0xff]   ;;  %v250_v9 = vld [vmem:[%s334_s1 + $0x30] sm:$0xff]  }
   0x3   :  { %125 = vmatprep.subr.bf16.mxu0 %v259_v0  ;;  %226 = vmatprep.subr.bf16.mxu1 %v259_v0  ;;  %v258_v6 = vld [vmem:[%s335_s0 + $0x14] ss:$8 sps:$4 sm:$0xff]   ;;  %v248_v7 = vld [vmem:[%s334_s1 + $0x20] sm:$0xff]   ;;  %v249_v8 = vld [vmem:[%s334_s1 + $0x28] sm:$0xff]  }
   0x4   :  { %215 = vmatprep.mubr.msk.bf16.mxu0 %vm116_vm0, %v255_v5  ;;  %216 = vmatprep.mubr.msk.bf16.mxu1 %vm116_vm0, %v258_v6  ;;  %v251_v10 = vld [vmem:[%s334_s1 + $0x38] sm:$0xff]   ;;  %v252_v11 = vld [vmem:[%s334_s1 + $0x40] sm:$0xff]  }
   0x5   :  { %v253_v12 = vld [vmem:[%s335_s0] ss:$8 sps:$4 sm:$0xff]   ;;  %v256_v13 = vld [vmem:[%s335_s0 + $0x10] ss:$8 sps:$4 sm:$0xff]  }
   0x6   :  { %126 = vmatpush1.bf16.msra.mxu0 %v245_v2  ;;  %235 = vmatpush1.bf16.msra.mxu1 %v245_v2  ;;  %v201_v14 = vld [vmem:[%s336_s2] ss:$0 sm:$0xff] }
   0x7   :  { %127 = vmatprep.subr.bf16.mxu0 %v259_v0  ;;  %227 = vmatprep.subr.bf16.mxu1 %v259_v0 }
   0xa   :  { %128 = vmatpush1.bf16.msra.mxu0 %v246_v3  ;;  %236 = vmatpush1.bf16.msra.mxu1 %v246_v3 }
   0xb   :  { %129 = vmatprep.subr.bf16.mxu0 %v259_v0  ;;  %228 = vmatprep.subr.bf16.mxu1 %v259_v0 }
   0xe   :  { %130 = vmatpush1.bf16.msra.mxu0 %v247_v4  ;;  %237 = vmatpush1.bf16.msra.mxu1 %v247_v4 }
   0xf   :  { %131 = vmatprep.subr.bf16.mxu0 %v259_v0  ;;  %229 = vmatprep.subr.bf16.mxu1 %v259_v0 }
  0x12   :  { %132 = vmatpush1.bf16.msra.mxu0 %v248_v7  ;;  %238 = vmatpush1.bf16.msra.mxu1 %v248_v7 }
  0x13   :  { %133 = vmatprep.subr.bf16.mxu0 %v259_v0  ;;  %230 = vmatprep.subr.bf16.mxu1 %v259_v0 }
  0x16   :  { %134 = vmatpush1.bf16.msra.mxu0 %v249_v8  ;;  %239 = vmatpush1.bf16.msra.mxu1 %v249_v8 }
  0x17   :  { %135 = vmatprep.subr.bf16.mxu0 %v259_v0  ;;  %231 = vmatprep.subr.bf16.mxu1 %v259_v0 }
  0x1a   :  { %136 = vmatpush1.bf16.msra.mxu0 %v250_v9  ;;  %240 = vmatpush1.bf16.msra.mxu1 %v250_v9 }
  0x1b   :  { %137 = vmatprep.subr.bf16.mxu0 %v259_v0  ;;  %232 = vmatprep.subr.bf16.mxu1 %v259_v0 }
  0x1e   :  { %138 = vmatpush1.bf16.msra.mxu0 %v251_v10  ;;  %241 = vmatpush1.bf16.msra.mxu1 %v251_v10 }
  0x1f   :  { %139 = vmatprep.subr.bf16.mxu0 %v259_v0  ;;  %233 = vmatprep.subr.bf16.mxu1 %v259_v0 }
  0x22   :  { %140 = vmatpush1.bf16.msra.mxu0 %v252_v11  ;;  %242 = vmatpush1.bf16.msra.mxu1 %v252_v11 }
  0x25   :  { %156 = vmatmul.mubr.bf16.vlgmr.msra.gmra.mrb[0].mxu0 %v253_v12  ;;  %164 = vmatmul.mubr.bf16.vlgmr.msra.gmra.mrb[0].mxu1 %v256_v13 }
  0xf8   :  { %v157_v15 = vpop.f32.mrb[0].mxu0  ;;  %v165_v16 = vpop.f32.mrb[0].mxu1 }
  0xf9   :  { %v158_v17 = vadd.f32 %v201_v14, %v157_v15  ;;  %v166_v18 = vadd.f32 %v201_v14, %v165_v16  ;;  %v159_v19 = vpop.f32.mrb[1].mxu0  ;;  %v167_v20 = vpop.f32.mrb[1].mxu1 }
  0xfa   :  { %v160_v21 = vpop.f32.mrb[2].mxu0  ;;  %v168_v22 = vpop.f32.mrb[2].mxu1 }
  0xfb   :  { %v172_v23 = vmax.f32 %v158_v17, 0.0  ;;  %v174_v24 = vmax.f32 %v166_v18, 0.0  ;;  %v161_v25 = vadd.f32 %v201_v14, %v160_v21  ;;  %v169_v26 = vadd.f32 %v201_v14, %v168_v22  ;;  %v162_v27 = vpop.f32.mrb[3].mxu0  ;;  %v170_v28 = vpop.f32.mrb[3].mxu1 }
  0xfd   :  { %v221_v29 = vpack.c.bf16 %v172_v23, %v172_v23  ;;  %v223_v30 = vpack.c.bf16 %v174_v24, %v174_v24  ;;  %v173_v31 = vmax.f32 %v161_v25, 0.0  ;;  %v175_v32 = vmax.f32 %v169_v26, 0.0 }
  0xff   :  { %193 = vst.msk [vmem:[%s337_s3] sm:$0xf] %vm192_vm1, %v221_v29  ;;  %195 = vst.msk [vmem:[%s337_s3 + $0x8] sm:$0xf] %vm192_vm1, %v223_v30  ;;  %v222_v33 = vpack.c.bf16 %v173_v31, %v173_v31  ;;  %v224_v34 = vpack.c.bf16 %v175_v32, %v175_v32 }
 0x101   :  { %194 = vst.msk [vmem:[%s337_s3 + $0x4] sm:$0xf] %vm192_vm1, %v222_v33  ;;  %196 = vst.msk [vmem:[%s337_s3 + $0xc] sm:$0xf] %vm192_vm1, %v224_v34 }

// kernel: vqvae_forward.20
= control target key start
LH: loop header
LB: loop body
LE: loop exit
PB: predicated region body
PF: predicated region fallthrough
CT: control target
= control target key end

     0   :  { %vm204_vm0 = vcmask 261120   ;;  %vm329_vm1 = vcmask 519168   ;;  %s550_s1 = inlined_call_operand.vmem [shape: bf16[288,64], index: 1, kind: input, shape index: {}]   ;;  %s551_s0 = inlined_call_operand.vmem [shape: bf16[32,288], index: 0, kind: input, shape index: {}]   ;;  %s552_s2 = inlined_call_operand.vmem [shape: f32[1,64], index: 2, kind: input, shape index: {}]   ;;  %s553_s3 = inlined_call_operand.vmem [shape: bf16[32,64], index: 3, kind: output, shape index: {}]  }
   0x1   :  { %v413_v0 = vld [vmem:[%s550_s1 + $0x40] sm:$0xff]   ;;  %v415_v2 = vld [vmem:[%s550_s1 + $0x48] sm:$0xff]   ;;  %v417_v4 = vld [vmem:[%s550_s1 + $0x50] sm:$0xff]  }
   0x2   :  { %v414_v1 = vld [vmem:[%s550_s1] sm:$0xff]   ;;  %373 = vmatprep.subr.bf16.mxu0 %v413_v0  ;;  %v416_v3 = vld [vmem:[%s550_s1 + $0x8] sm:$0xff]   ;;  %v418_v5 = vld [vmem:[%s550_s1 + $0x10] sm:$0xff]  }
   0x3   :  { %374 = vmatpush3.bf16.msra.mxu0 %v414_v1  ;;  %v419_v6 = vld [vmem:[%s550_s1 + $0x58] sm:$0xff]   ;;  %v421_v8 = vld [vmem:[%s550_s1 + $0x60] sm:$0xff]   ;;  %v423_v11 = vld [vmem:[%s550_s1 + $0x68] sm:$0xff]  }
   0x4   :  { %375 = vmatprep.subr.bf16.mxu0 %v415_v2  ;;  %v420_v7 = vld [vmem:[%s550_s1 + $0x18] sm:$0xff]   ;;  %v422_v9 = vld [vmem:[%s550_s1 + $0x20] sm:$0xff]   ;;  %v424_v12 = vld [vmem:[%s550_s1 + $0x28] sm:$0xff]  }
   0x5   :  { %v428_v10 = vld [vmem:[%s550_s1 + $0x80] sm:$0xff]   ;;  %v425_v13 = vld [vmem:[%s550_s1 + $0x70] sm:$0xff]   ;;  %v433_v15 = vld [vmem:[%s550_s1 + $0x88] sm:$0xff]  }
   0x6   :  { %405 = vmatprep.subr.bf16.mxu1 %v428_v10  ;;  %v432_v14 = vld [vmem:[%s551_s0 + $0x4] ss:$12 sps:$4 sm:$0xff]   ;;  %v434_v16 = vld [vmem:[%s551_s0 + $0x8] ss:$12 sps:$4 sm:$0xff]   ;;  %v435_v17 = vld [vmem:[%s551_s0 + $0x20] ss:$12 sps:$4 sm:$0xff]  }
   0x7   :  { %376 = vmatpush3.bf16.msra.mxu0 %v416_v3  ;;  %406 = vmatpush3.bf16.msra.mxu1 %v428_v10  ;;  %v426_v18 = vld [vmem:[%s550_s1 + $0x30] sm:$0xff]   ;;  %v427_v19 = vld [vmem:[%s550_s1 + $0x78] sm:$0xff]   ;;  %v430_v21 = vld [vmem:[%s551_s0] ss:$12 sps:$4 sm:$0xff]  }
   0x8   :  { %377 = vmatprep.subr.bf16.mxu0 %v417_v4  ;;  %243 = vmatprep.mubr.bf16.mxu0 %v432_v14  ;;  %v429_v20 = vld [vmem:[%s550_s1 + $0x38] sm:$0xff]   ;;  %v338_v30 = vld [vmem:[%s552_s2] ss:$0 sm:$0xff] }
   0x9   :  { %407 = vmatprep.subr.bf16.mxu1 %v433_v15  ;;  %409 = vmatprep.mubr.msk.bf16.mxu1 %vm204_vm0, %v434_v16  ;;  %v436_v22 = vld [vmem:[%s551_s0 + $0x1c] ss:$12 sps:$4 sm:$0xff]   ;;  %v438_v23 = vld [vmem:[%s551_s0 + $0x18] ss:$12 sps:$4 sm:$0xff]  }
   0xb   :  { %378 = vmatpush3.bf16.msra.mxu0 %v418_v5  ;;  %408 = vmatpush3.bf16.msra.mxu1 %v433_v15 }
   0xc   :  { %379 = vmatprep.subr.bf16.mxu0 %v419_v6 }
   0xe   :  { %410 = vmatmul.mubr.msk.bf16.vlgmr.msra.gmra.mrb[0].mxu1 %vm204_vm0, %v435_v17 }
   0xf   :  { %380 = vmatpush3.bf16.msra.mxu0 %v420_v7 }
  0x10   :  { %381 = vmatprep.subr.bf16.mxu0 %v421_v8 }
  0x13   :  { %382 = vmatpush3.bf16.msra.mxu0 %v422_v9 }
  0x14   :  { %383 = vmatprep.subr.bf16.mxu0 %v423_v11 }
  0x17   :  { %384 = vmatpush3.bf16.msra.mxu0 %v424_v12 }
  0x18   :  { %385 = vmatprep.subr.bf16.mxu0 %v425_v13 }
  0x1b   :  { %386 = vmatpush3.bf16.msra.mxu0 %v426_v18 }
  0x1c   :  { %387 = vmatprep.subr.bf16.mxu0 %v427_v19 }
  0x1f   :  { %388 = vmatpush3.bf16.msra.mxu0 %v429_v20 }
  0x22   :  { %244 = vmatmul.mubr.bf16.vlgmr.msra.gmra.mrb[0].mxu0 %v430_v21 }
  0x23   :  { %251 = vmatprep.mubr.bf16.mxu0 %v436_v22 }
  0x2a   :  { %252 = vmatmul.mubr.bf16.gmra.mrb[4].mxu0 %v438_v23 }
  0xe1   :  { %v411_v24 = vpop.f32.mrb[0].mxu1 }
  0xe2   :  { %v294_v25 = vpop.f32.mrb[1].mxu1 }
  0xe3   :  { %v412_v26 = vpop.f32.mrb[2].mxu1 }
  0xe4   :  { %v297_v27 = vpop.f32.mrb[3].mxu1 }
  0xf5   :  { %v389_v28 = vpop.f32.mrb[0].mxu0 }
  0xf6   :  { %v390_v29 = vpop.f32.mrb[1].mxu0 }
  0xf7   :  { %v391_v31 = vadd.f32 %v390_v29, %v389_v28  ;;  %v392_v32 = vpop.f32.mrb[2].mxu0 }
  0xf8   :  { %v393_v33 = vpop.f32.mrb[3].mxu0 }
  0xf9   :  { %v394_v34 = vadd.f32 %v393_v33, %v392_v32  ;;  %v246_v35 = vadd.f32 %v391_v31, %v338_v30 }
  0xfb   :  { %v295_v36 = vadd.f32 %v294_v25, %v246_v35  ;;  %v249_v37 = vadd.f32 %v394_v34, %v338_v30 }
  0xfd   :  { %v309_v38 = vmax.f32 %v295_v36, 0.0  ;;  %v298_v39 = vadd.f32 %v297_v27, %v249_v37  ;;  %v395_v40 = vpop.f32.mrb[4].mxu0 }
  0xfe   :  { %v396_v41 = vpop.f32.mrb[5].mxu0 }
  0xff   :  { %v369_v42 = vpack.c.bf16 %v309_v38, %v309_v38  ;;  %v310_v43 = vmax.f32 %v298_v39, 0.0  ;;  %v397_v44 = vadd.f32 %v396_v41, %v395_v40  ;;  %v398_v45 = vpop.f32.mrb[6].mxu0 }
 0x100   :  { %v399_v46 = vpop.f32.mrb[7].mxu0 }
 0x101   :  { %330 = vst.msk [vmem:[%s553_s3] sm:$0xf] %vm329_vm1, %v369_v42  ;;  %v370_v47 = vpack.c.bf16 %v310_v43, %v310_v43  ;;  %v254_v48 = vadd.f32 %v397_v44, %v338_v30  ;;  %v400_v49 = vadd.f32 %v399_v46, %v398_v45 }
 0x103   :  { %331 = vst.msk [vmem:[%s553_s3 + $0x4] sm:$0xf] %vm329_vm1, %v370_v47  ;;  %v303_v50 = vadd.f32 %v411_v24, %v254_v48  ;;  %v257_v51 = vadd.f32 %v400_v49, %v338_v30 }
 0x105   :  { %v311_v52 = vmax.f32 %v303_v50, 0.0  ;;  %v306_v53 = vadd.f32 %v412_v26, %v257_v51 }
 0x107   :  { %v371_v54 = vpack.c.bf16 %v311_v52, %v311_v52  ;;  %v312_v55 = vmax.f32 %v306_v53, 0.0 }
 0x109   :  { %332 = vst.msk [vmem:[%s553_s3 + $0x8] sm:$0xf] %vm329_vm1, %v371_v54  ;;  %v372_v56 = vpack.c.bf16 %v312_v55, %v312_v55 }
 0x10b   :  { %333 = vst.msk [vmem:[%s553_s3 + $0xc] sm:$0xf] %vm329_vm1, %v372_v56 }

// kernel: vqvae_forward.21
= control target key start
LH: loop header
LB: loop body
LE: loop exit
PB: predicated region body
PF: predicated region fallthrough
CT: control target
= control target key end

     0   :  { %v427_v0 = vmov 0   ;;  %vm182_vm0 = vcmask 130048   ;;  %vm320_vm1 = vcmask 97280   ;;  %s616_s1 = inlined_call_operand.vmem [shape: bf16[144,12], index: 1, kind: input, shape index: {}]   ;;  %s617_s0 = inlined_call_operand.vmem [shape: bf16[128,144], index: 0, kind: input, shape index: {}]   ;;  %s618_s2 = inlined_call_operand.vmem [shape: f32[1,12], index: 2, kind: input, shape index: {}]   ;;  %s619_s3 = inlined_call_operand.vmem [shape: f32[128,12], index: 3, kind: output, shape index: {}]  }
   0x1   :  { %207 = vmatprep.subr.bf16.mxu0 %v427_v0  ;;  %375 = vmatprep.subr.bf16.mxu1 %v427_v0  ;;  %v394_v1 = vld [vmem:[%s616_s1] sm:$0xff]   ;;  %v395_v2 = vld [vmem:[%s616_s1 + $0x8] sm:$0xff]   ;;  %v396_v3 = vld [vmem:[%s616_s1 + $0x10] sm:$0xff]  }
   0x2   :  { %208 = vmatpush1.bf16.msra.mxu0 %v394_v1  ;;  %384 = vmatpush1.bf16.msra.mxu1 %v394_v1  ;;  %v397_v4 = vld [vmem:[%s616_s1 + $0x18] sm:$0xff]   ;;  %v405_v5 = vld [vmem:[%s617_s0 + $0x4] ss:$8 sps:$4 sm:$0xff]   ;;  %v400_v9 = vld [vmem:[%s616_s1 + $0x30] sm:$0xff]  }
   0x3   :  { %209 = vmatprep.subr.bf16.mxu0 %v427_v0  ;;  %376 = vmatprep.subr.bf16.mxu1 %v427_v0  ;;  %v408_v6 = vld [vmem:[%s617_s0 + $0x44] ss:$8 sps:$4 sm:$0xff]   ;;  %v401_v10 = vld [vmem:[%s616_s1 + $0x38] sm:$0xff]   ;;  %v403_v12 = vld [vmem:[%s617_s0] ss:$8 sps:$4 sm:$0xff]  }
   0x4   :  { %367 = vmatprep.mubr.msk.bf16.mxu0 %vm182_vm0, %v405_v5  ;;  %371 = vmatprep.mubr.msk.bf16.mxu1 %vm182_vm0, %v408_v6  ;;  %v398_v7 = vld [vmem:[%s616_s1 + $0x20] sm:$0xff]   ;;  %v399_v8 = vld [vmem:[%s616_s1 + $0x28] sm:$0xff]   ;;  %v409_v14 = vld [vmem:[%s617_s0 + $0x14] ss:$8 sps:$4 sm:$0xff]  }
   0x5   :  { %v402_v11 = vld [vmem:[%s616_s1 + $0x40] sm:$0xff]   ;;  %v411_v15 = vld [vmem:[%s617_s0 + $0x54] ss:$8 sps:$4 sm:$0xff]   ;;  %v413_v16 = vld [vmem:[%s617_s0 + $0x10] ss:$8 sps:$4 sm:$0xff]  }
   0x6   :  { %210 = vmatpush1.bf16.msra.mxu0 %v395_v2  ;;  %385 = vmatpush1.bf16.msra.mxu1 %v395_v2  ;;  %v406_v13 = vld [vmem:[%s617_s0 + $0x40] ss:$8 sps:$4 sm:$0xff]   ;;  %v414_v17 = vld [vmem:[%s617_s0 + $0x50] ss:$8 sps:$4 sm:$0xff]   ;;  %v415_v18 = vld [vmem:[%s617_s0 + $0x24] ss:$8 sps:$4 sm:$0xff]  }
   0x7   :  { %211 = vmatprep.subr.bf16.mxu0 %v427_v0  ;;  %377 = vmatprep.subr.bf16.mxu1 %v427_v0  ;;  %v417_v19 = vld [vmem:[%s617_s0 + $0x64] ss:$8 sps:$4 sm:$0xff]   ;;  %v419_v20 = vld [vmem:[%s617_s0 + $0x20] ss:$8 sps:$4 sm:$0xff]   ;;  %v421_v22 = vld [vmem:[%s617_s0 + $0x34] ss:$8 sps:$4 sm:$0xff]  }
   0x8   :  { %v420_v21 = vld [vmem:[%s617_s0 + $0x60] ss:$8 sps:$4 sm:$0xff]   ;;  %v423_v23 = vld [vmem:[%s617_s0 + $0x74] ss:$8 sps:$4 sm:$0xff]   ;;  %v425_v24 = vld [vmem:[%s617_s0 + $0x30] ss:$8 sps:$4 sm:$0xff]  }
   0x9   :  { %v426_v25 = vld [vmem:[%s617_s0 + $0x70] ss:$8 sps:$4 sm:$0xff]   ;;  %v534_v26 = vld [vmem:[%s618_s2] ss:$0 sm:$0xff] }
   0xa   :  { %212 = vmatpush1.bf16.msra.mxu0 %v396_v3  ;;  %386 = vmatpush1.bf16.msra.mxu1 %v396_v3 }
   0xb   :  { %213 = vmatprep.subr.bf16.mxu0 %v427_v0  ;;  %378 = vmatprep.subr.bf16.mxu1 %v427_v0 }
   0xe   :  { %214 = vmatpush1.bf16.msra.mxu0 %v397_v4  ;;  %387 = vmatpush1.bf16.msra.mxu1 %v397_v4 }
   0xf   :  { %215 = vmatprep.subr.bf16.mxu0 %v427_v0  ;;  %379 = vmatprep.subr.bf16.mxu1 %v427_v0 }
  0x12   :  { %216 = vmatpush1.bf16.msra.mxu0 %v398_v7  ;;  %388 = vmatpush1.bf16.msra.mxu1 %v398_v7 }
  0x13   :  { %217 = vmatprep.subr.bf16.mxu0 %v427_v0  ;;  %380 = vmatprep.subr.bf16.mxu1 %v427_v0 }
  0x16   :  { %218 = vmatpush1.bf16.msra.mxu0 %v399_v8  ;;  %389 = vmatpush1.bf16.msra.mxu1 %v399_v8 }
  0x17   :  { %219 = vmatprep.subr.bf16.mxu0 %v427_v0  ;;  %381 = vmatprep.subr.bf16.mxu1 %v427_v0 }
  0x1a   :  { %220 = vmatpush1.bf16.msra.mxu0 %v400_v9  ;;  %390 = vmatpush1.bf16.msra.mxu1 %v400_v9 }
  0x1b   :  { %221 = vmatprep.subr.bf16.mxu0 %v427_v0  ;;  %382 = vmatprep.subr.bf16.mxu1 %v427_v0 }
  0x1e   :  { %222 = vmatpush1.bf16.msra.mxu0 %v401_v10  ;;  %391 = vmatpush1.bf16.msra.mxu1 %v401_v10 }
  0x1f   :  { %223 = vmatprep.subr.bf16.mxu0 %v427_v0  ;;  %383 = vmatprep.subr.bf16.mxu1 %v427_v0 }
  0x22   :  { %224 = vmatpush1.bf16.msra.mxu0 %v402_v11  ;;  %392 = vmatpush1.bf16.msra.mxu1 %v402_v11 }
  0x25   :  { %240 = vmatmul.mubr.bf16.vlgmr.msra.gmra.mrb[0].mxu0 %v403_v12  ;;  %272 = vmatmul.mubr.bf16.vlgmr.msra.gmra.mrb[0].mxu1 %v406_v13 }
  0x26   :  { %368 = vmatprep.mubr.msk.bf16.mxu0 %vm182_vm0, %v409_v14  ;;  %372 = vmatprep.mubr.msk.bf16.mxu1 %vm182_vm0, %v411_v15 }
  0x2d   :  { %248 = vmatmul.mubr.bf16.gmra.mrb[4].mxu0 %v413_v16  ;;  %280 = vmatmul.mubr.bf16.gmra.mrb[4].mxu1 %v414_v17 }
  0x2e   :  { %369 = vmatprep.mubr.msk.bf16.mxu0 %vm182_vm0, %v415_v18  ;;  %373 = vmatprep.mubr.msk.bf16.mxu1 %vm182_vm0, %v417_v19 }
  0x35   :  { %256 = vmatmul.mubr.bf16.gmra.mrb[8].mxu0 %v419_v20  ;;  %288 = vmatmul.mubr.bf16.gmra.mrb[8].mxu1 %v420_v21 }
  0x36   :  { %370 = vmatprep.mubr.msk.bf16.mxu0 %vm182_vm0, %v421_v22  ;;  %374 = vmatprep.mubr.msk.bf16.mxu1 %vm182_vm0, %v423_v23 }
  0x3d   :  { %264 = vmatmul.mubr.bf16.gmra.mrb[12].mxu0 %v425_v24  ;;  %296 = vmatmul.mubr.bf16.gmra.mrb[12].mxu1 %v426_v25 }
  0xf8   :  { %v241_v27 = vpop.f32.mrb[0].mxu0  ;;  %v273_v28 = vpop.f32.mrb[0].mxu1 }
  0xf9   :  { %v242_v29 = vadd.f32 %v534_v26, %v241_v27  ;;  %v274_v30 = vadd.f32 %v534_v26, %v273_v28  ;;  %v243_v31 = vpop.f32.mrb[1].mxu0  ;;  %v275_v32 = vpop.f32.mrb[1].mxu1 }
  0xfa   :  { %v244_v33 = vpop.f32.mrb[2].mxu0  ;;  %v276_v34 = vpop.f32.mrb[2].mxu1 }
  0xfb   :  { %v304_v35 = vmax.f32 %v242_v29, 0.0  ;;  %v312_v36 = vmax.f32 %v274_v30, 0.0  ;;  %v245_v37 = vadd.f32 %v534_v26, %v244_v33  ;;  %v277_v38 = vadd.f32 %v534_v26, %v276_v34  ;;  %v246_v39 = vpop.f32.mrb[3].mxu0  ;;  %v278_v40 = vpop.f32.mrb[3].mxu1 }
  0xfd   :  { %321 = vst.msk [vmem:[%s619_s3] sm:$0xff] %vm320_vm1, %v304_v35  ;;  %329 = vst.msk [vmem:[%s619_s3 + $0x40] sm:$0xff] %vm320_vm1, %v312_v36  ;;  %v305_v41 = vmax.f32 %v245_v37, 0.0  ;;  %v313_v42 = vmax.f32 %v277_v38, 0.0 }
  0xff   :  { %322 = vst.msk [vmem:[%s619_s3 + $0x8] sm:$0xff] %vm320_vm1, %v305_v41  ;;  %330 = vst.msk [vmem:[%s619_s3 + $0x48] sm:$0xff] %vm320_vm1, %v313_v42 }
 0x100   :  { %v249_v43 = vpop.f32.mrb[4].mxu0  ;;  %v281_v44 = vpop.f32.mrb[4].mxu1 }
 0x101   :  { %v250_v45 = vadd.f32 %v534_v26, %v249_v43  ;;  %v282_v46 = vadd.f32 %v534_v26, %v281_v44  ;;  %v251_v47 = vpop.f32.mrb[5].mxu0  ;;  %v283_v48 = vpop.f32.mrb[5].mxu1 }
 0x102   :  { %v252_v49 = vpop.f32.mrb[6].mxu0  ;;  %v284_v50 = vpop.f32.mrb[6].mxu1 }
 0x103   :  { %v306_v51 = vmax.f32 %v250_v45, 0.0  ;;  %v314_v52 = vmax.f32 %v282_v46, 0.0  ;;  %v253_v53 = vadd.f32 %v534_v26, %v252_v49  ;;  %v285_v54 = vadd.f32 %v534_v26, %v284_v50  ;;  %v254_v55 = vpop.f32.mrb[7].mxu0  ;;  %v286_v56 = vpop.f32.mrb[7].mxu1 }
 0x105   :  { %323 = vst.msk [vmem:[%s619_s3 + $0x10] sm:$0xff] %vm320_vm1, %v306_v51  ;;  %331 = vst.msk [vmem:[%s619_s3 + $0x50] sm:$0xff] %vm320_vm1, %v314_v52  ;;  %v307_v57 = vmax.f32 %v253_v53, 0.0  ;;  %v315_v58 = vmax.f32 %v285_v54, 0.0 }
 0x107   :  { %324 = vst.msk [vmem:[%s619_s3 + $0x18] sm:$0xff] %vm320_vm1, %v307_v57  ;;  %332 = vst.msk [vmem:[%s619_s3 + $0x58] sm:$0xff] %vm320_vm1, %v315_v58 }
 0x108   :  { %v257_v59 = vpop.f32.mrb[8].mxu0  ;;  %v289_v60 = vpop.f32.mrb[8].mxu1 }
 0x109   :  { %v258_v61 = vadd.f32 %v534_v26, %v257_v59  ;;  %v290_v62 = vadd.f32 %v534_v26, %v289_v60  ;;  %v259_v63 = vpop.f32.mrb[9].mxu0  ;;  %v291_v0 = vpop.f32.mrb[9].mxu1 }
 0x10a   :  { %v260_v1 = vpop.f32.mrb[10].mxu0  ;;  %v292_v2 = vpop.f32.mrb[10].mxu1 }
 0x10b   :  { %v308_v3 = vmax.f32 %v258_v61, 0.0  ;;  %v316_v4 = vmax.f32 %v290_v62, 0.0  ;;  %v261_v5 = vadd.f32 %v534_v26, %v260_v1  ;;  %v293_v6 = vadd.f32 %v534_v26, %v292_v2  ;;  %v262_v7 = vpop.f32.mrb[11].mxu0  ;;  %v294_v8 = vpop.f32.mrb[11].mxu1 }
 0x10d   :  { %325 = vst.msk [vmem:[%s619_s3 + $0x20] sm:$0xff] %vm320_vm1, %v308_v3  ;;  %333 = vst.msk [vmem:[%s619_s3 + $0x60] sm:$0xff] %vm320_vm1, %v316_v4  ;;  %v309_v9 = vmax.f32 %v261_v5, 0.0  ;;  %v317_v10 = vmax.f32 %v293_v6, 0.0 }
 0x10f   :  { %326 = vst.msk [vmem:[%s619_s3 + $0x28] sm:$0xff] %vm320_vm1, %v309_v9  ;;  %334 = vst.msk [vmem:[%s619_s3 + $0x68] sm:$0xff] %vm320_vm1, %v317_v10 }
 0x110   :  { %v265_v11 = vpop.f32.mrb[12].mxu0  ;;  %v297_v12 = vpop.f32.mrb[12].mxu1 }
 0x111   :  { %v266_v13 = vadd.f32 %v534_v26, %v265_v11  ;;  %v298_v14 = vadd.f32 %v534_v26, %v297_v12  ;;  %v267_v15 = vpop.f32.mrb[13].mxu0  ;;  %v299_v16 = vpop.f32.mrb[13].mxu1 }
 0x112   :  { %v268_v17 = vpop.f32.mrb[14].mxu0  ;;  %v300_v18 = vpop.f32.mrb[14].mxu1 }
 0x113   :  { %v310_v19 = vmax.f32 %v266_v13, 0.0  ;;  %v318_v20 = vmax.f32 %v298_v14, 0.0  ;;  %v269_v21 = vadd.f32 %v534_v26, %v268_v17  ;;  %v301_v22 = vadd.f32 %v534_v26, %v300_v18  ;;  %v270_v23 = vpop.f32.mrb[15].mxu0  ;;  %v302_v24 = vpop.f32.mrb[15].mxu1 }
 0x115   :  { %327 = vst.msk [vmem:[%s619_s3 + $0x30] sm:$0xff] %vm320_vm1, %v310_v19  ;;  %335 = vst.msk [vmem:[%s619_s3 + $0x70] sm:$0xff] %vm320_vm1, %v318_v20  ;;  %v311_v25 = vmax.f32 %v269_v21, 0.0  ;;  %v319_v27 = vmax.f32 %v301_v22, 0.0 }
 0x117   :  { %328 = vst.msk [vmem:[%s619_s3 + $0x38] sm:$0xff] %vm320_vm1, %v311_v25  ;;  %336 = vst.msk [vmem:[%s619_s3 + $0x78] sm:$0xff] %vm320_vm1, %v319_v27 }

</bundles_post_ra>
